<compile_context>
chip_gen: v6e
topology: v6e:2x2x1
jax: 0.10.0
libtpu: 0.0.40
codegen_flags: <defaults>
</compile_context>

<pallas_src>
import math

import jax
import jax.numpy as jnp
from jax import lax
from jax.experimental import pallas as pl
from jax.experimental.pallas import tpu as pltpu


# ------------------------------- helpers -------------------------------------

def _round_up(x: int, m: int) -> int:
    return ((x + m - 1) // m) * m


def _cdiv(a: int, b: int) -> int:
    return (a + b - 1) // b


def make_fixed_embedding_table(c_in: int, d_model: int) -> jnp.ndarray:
    """Deterministic sinusoidal table, identical to FixedEmbedding.__init__."""
    position = jnp.arange(c_in, dtype=jnp.float32)[:, None]                 # (c_in, 1)
    div_term = jnp.exp(
        jnp.arange(0, d_model, 2, dtype=jnp.float32)
        * -(math.log(10000.0) / d_model)
    )                                                                       # (ceil(d/2),)
    w = jnp.zeros((c_in, d_model), dtype=jnp.float32)
    w = w.at[:, 0::2].set(jnp.sin(position * div_term)[:, : (d_model + 1) // 2])
    w = w.at[:, 1::2].set(jnp.cos(position * div_term)[:, : d_model // 2])
    return w


# ------------------------------- Pallas kernel -------------------------------

def _make_temporal_embed_kernel(pack, f_in, cols, offsets, k_pad, out_dtype):
    """Kernel factory: column selection + row offsets are compile-time consts.

    ids_ref   : (TN_P, pack*f_in) int32 -- raw x values, pack sub-rows per row.
    table_ref : (pack*128, Dp) f32      -- block-diagonal fused table.
    out_ref   : (TN_P, Dp)              -- packed, lane-dense output tile.
    """
    def kernel(ids_ref, table_ref, out_ref):
        tn_p = ids_ref.shape[0]
        ids = ids_ref[...]                                          # (tn_p, pack*f_in)
        iota = lax.broadcasted_iota(jnp.int32, (tn_p, k_pad), 1)    # (tn_p, 128)

        blocks = []
        for p in range(pack):
            mask = None
            for col, off in zip(cols, offsets):
                c = p * f_in + col
                idv = ids[:, c:c + 1] + off                         # (tn_p, 1)
                m = iota == idv                                     # (tn_p, 128) bool
                mask = m if mask is None else (mask | m)            # disjoint rows -> OR
            blocks.append(mask.astype(jnp.float32))                 # one convert / sub-row

        # 128-wide, vreg-aligned blocks -> lane concat is register placement.
        multi = blocks[0] if pack == 1 else jnp.concatenate(blocks, axis=-1)

        # Single MXU matmul: (tn_p, pack*128) @ (pack*128, Dp); exact f32.
        acc = jnp.dot(multi, table_ref[...],
                      preferred_element_type=jnp.float32,
                      precision=lax.Precision.HIGHEST)
        out_ref[...] = acc.astype(out_dtype)

    return kernel


# --------------------------------- wrapper ------------------------------------

class TemporalEmbeddingPallas:
    """JAX/Pallas equivalent of TemporalEmbedding(d_model, embed_type='fixed')."""

    MINUTE_SIZE = 4
    HOUR_SIZE = 24
    WEEKDAY_SIZE = 7
    DAY_SIZE = 32
    MONTH_SIZE = 13
    K_PAD = 128  # fused table rows padded to one full MXU contraction

    def __init__(self, d_model: int, freq: str = "h", out_dtype=jnp.float32):
        self.d_model = d_model
        self.freq = freq
        self.out_dtype = out_dtype  # set to jnp.bfloat16 to halve HBM writeback

        # (column index in x, table) pairs, matching the PyTorch forward order.
        cols = [3, 2, 1, 0]  # hour, weekday, day, month
        sizes = [self.HOUR_SIZE, self.WEEKDAY_SIZE, self.DAY_SIZE, self.MONTH_SIZE]
        if freq == "t":
            cols.append(4)
            sizes.append(self.MINUTE_SIZE)
        self.cols = tuple(cols)
        self.sizes = tuple(sizes)
        self.tables = [make_fixed_embedding_table(s, d_model) for s in sizes]

        offsets, off = [], 0
        for s in sizes:
            offsets.append(off)
            off += s
        assert off <= self.K_PAD, "fused table exceeds 128 rows"
        self.offsets = tuple(offsets)

        # Lane-dense output geometry for every d_model:
        #  - 128 % d_model == 0  -> pack rows so the packed width is exactly 128
        #  - otherwise           -> pad the table's columns up to a mult. of 128
        if d_model < 128 and 128 % d_model == 0:
            self.pack = 128 // d_model
            self.d_col = d_model
        else:
            self.pack = 1
            self.d_col = _round_up(d_model, 128)

        fused = jnp.zeros((self.K_PAD, self.d_col), dtype=jnp.float32)
        for o, t in zip(offsets, self.tables):
            fused = fused.at[o:o + t.shape[0], :d_model].set(t)

        # Block-diagonal fused table: (pack*128, pack*d_col).
        if self.pack > 1:
            self.table_big = jnp.kron(jnp.eye(self.pack, dtype=jnp.float32), fused)
        else:
            self.table_big = fused

    def __call__(self, x: jnp.ndarray, *, tn: int = 8192) -> jnp.ndarray:
        B, L, f_in = x.shape
        N = B * L
        d_model, pack, d_col = self.d_model, self.pack, self.d_col

        # Large row tile (amortizes per-step pipeline overhead), aligned so the
        # packed output block keeps 8-sublane alignment, and capped so the grid
        # keeps >= ~4 steps (both v7x TensorCores get work via "parallel").
        row_align = 8 * pack
        tn_req = max(row_align, _round_up(tn, row_align))
        tn_cap = max(row_align, _round_up(_cdiv(N, 4), row_align))
        tn = min(tn_req, tn_cap)
        Np = _round_up(N, tn)

        # Host-side prep is only a reshape (+ tiny pad); column selection and
        # fused-table offsets live in the kernel as compile-time constants.
        idx = x.reshape(N, f_in).astype(jnp.int32)
        if Np != N:
            idx = jnp.pad(idx, ((0, Np - N), (0, 0)))  # pad rows -> garbage, sliced off
        ids = idx.reshape(Np // pack, pack * f_in)

        tn_p = tn // pack
        d_packed = pack * d_col
        tbl = self.table_big

        kernel = _make_temporal_embed_kernel(pack, f_in, self.cols, self.offsets,
                                             self.K_PAD, self.out_dtype)

        out = pl.pallas_call(
            kernel,
            out_shape=jax.ShapeDtypeStruct((Np // pack, d_packed), self.out_dtype),
            grid=(Np // tn,),
            in_specs=[
                pl.BlockSpec((tn_p, pack * f_in), lambda i: (i, 0)),
                pl.BlockSpec(tbl.shape, lambda i: (0, 0)),  # fused table, resident
            ],
            out_specs=pl.BlockSpec((tn_p, d_packed), lambda i: (i, 0)),
            compiler_params=pltpu.CompilerParams(
                dimension_semantics=("parallel",),
            ),
        )(ids, tbl)

        # Packed (Np//pack, pack*d_col) is row-major identical to (Np, d_col);
        # slice off padded tail rows and (if any) padded columns.
        return out.reshape(Np, d_col)[:N, :d_model].reshape(B, L, d_model)


# -------------------------------- reference -----------------------------------

def temporal_embedding_ref(mod: TemporalEmbeddingPallas, x: jnp.ndarray) -> jnp.ndarray:
    """Pure-JAX reference mirroring the PyTorch forward."""
    x = x.astype(jnp.int32)
    out = jnp.zeros(x.shape[:2] + (mod.d_model,), jnp.float32)
    for col, tbl in zip(mod.cols, mod.tables):
        out = out + jnp.take(tbl, x[:, :, col], axis=0)
    return out


# ----------------------------------- main --------------------------------------

if __name__ == "__main__":
    B, L, F = 2, 8, 5

    key = jax.random.PRNGKey(0)
    k_m, k_d, k_w, k_h, k_mi = jax.random.split(key, 5)
    month = jax.random.randint(k_m, (B, L), 0, TemporalEmbeddingPallas.MONTH_SIZE)
    day = jax.random.randint(k_d, (B, L), 0, TemporalEmbeddingPallas.DAY_SIZE)
    weekday = jax.random.randint(k_w, (B, L), 0, TemporalEmbeddingPallas.WEEKDAY_SIZE)
    hour = jax.random.randint(k_h, (B, L), 0, TemporalEmbeddingPallas.HOUR_SIZE)
    minute = jax.random.randint(k_mi, (B, L), 0, TemporalEmbeddingPallas.MINUTE_SIZE)
    # column order matches the PyTorch module: [month, day, weekday, hour, minute]
    x = jnp.stack([month, day, weekday, hour, minute], axis=-1).astype(jnp.int32)

    # Case 1: d_model=32, freq='h'  -> packed lane-dense path (pack=4).
    mod = TemporalEmbeddingPallas(32, freq="h")
    out = jax.block_until_ready(mod(x))
    ref = temporal_embedding_ref(mod, x)
    assert out.shape == (B, L, 32), out.shape
    assert jnp.allclose(out, ref, atol=1e-5, rtol=1e-5), float(
        jnp.max(jnp.abs(out - ref))
    )

    # Case 2: d_model=48, freq='t'  -> column-padded lane-dense path (pack=1).
    mod_t = TemporalEmbeddingPallas(48, freq="t")
    out_t = jax.block_until_ready(mod_t(x))
    ref_t = temporal_embedding_ref(mod_t, x)
    assert out_t.shape == (B, L, 48), out_t.shape
    assert jnp.allclose(out_t, ref_t, atol=1e-5, rtol=1e-5), float(
        jnp.max(jnp.abs(out_t - ref_t))
    )

    print("KERNEL_OK")
</pallas_src>

<mosaic_0001>
module attributes {stable_mosaic.version = 11 : i64} {
  func.func @kernel(%arg0: i32, %arg1: memref<8x20xi32, #tpu.memory_space<vmem>>, %arg2: memref<512x128xf32, #tpu.memory_space<vmem>>, %arg3: memref<8x128xf32, #tpu.memory_space<vmem>>) attributes {dimension_semantics = [#tpu.dimension_semantics<parallel>], iteration_bounds = array<i64: 1>, scalar_prefetch = 0 : i64, scratch_operands = 0 : i64, tpu.core_type = #tpu.core_type<tc>, window_params = [{transform_indices = @transform_0, window_bounds = array<i64: 8, 20>}, {pipeline_mode = #tpu.pipeline_mode<synchronous>, transform_indices = @transform_1, window_bounds = array<i64: 512, 128>}, {transform_indices = @transform_2, window_bounds = array<i64: 8, 128>}]} {
    %c0 = arith.constant 0 : index
    %c0_0 = arith.constant 0 : index
    %0 = vector.load %arg1[%c0, %c0_0] : memref<8x20xi32, #tpu.memory_space<vmem>>, vector<8x20xi32>
    %1 = tpu.iota {dimensions = array<i32: 1>} : vector<8x128xi32>
    %2 = vector.extract_strided_slice %0 {offsets = [0, 3], sizes = [8, 1], strides = [1, 1]} : vector<8x20xi32> to vector<8x1xi32>
    %c0_i32 = arith.constant 0 : i32
    %3 = vector.broadcast %c0_i32 : i32 to vector<8x1xi32>
    %4 = arith.addi %2, %3 : vector<8x1xi32>
    %5 = vector.broadcast %4 : vector<8x1xi32> to vector<8x128xi32>
    %6 = arith.cmpi eq, %1, %5 : vector<8x128xi32>
    %7 = vector.extract_strided_slice %0 {offsets = [0, 2], sizes = [8, 1], strides = [1, 1]} : vector<8x20xi32> to vector<8x1xi32>
    %c24_i32 = arith.constant 24 : i32
    %8 = vector.broadcast %c24_i32 : i32 to vector<8x1xi32>
    %9 = arith.addi %7, %8 : vector<8x1xi32>
    %10 = vector.broadcast %9 : vector<8x1xi32> to vector<8x128xi32>
    %11 = arith.cmpi eq, %1, %10 : vector<8x128xi32>
    %12 = arith.ori %6, %11 : vector<8x128xi1>
    %13 = vector.extract_strided_slice %0 {offsets = [0, 1], sizes = [8, 1], strides = [1, 1]} : vector<8x20xi32> to vector<8x1xi32>
    %c31_i32 = arith.constant 31 : i32
    %14 = vector.broadcast %c31_i32 : i32 to vector<8x1xi32>
    %15 = arith.addi %13, %14 : vector<8x1xi32>
    %16 = vector.broadcast %15 : vector<8x1xi32> to vector<8x128xi32>
    %17 = arith.cmpi eq, %1, %16 : vector<8x128xi32>
    %18 = arith.ori %12, %17 : vector<8x128xi1>
    %19 = vector.extract_strided_slice %0 {offsets = [0, 0], sizes = [8, 1], strides = [1, 1]} : vector<8x20xi32> to vector<8x1xi32>
    %c63_i32 = arith.constant 63 : i32
    %20 = vector.broadcast %c63_i32 : i32 to vector<8x1xi32>
    %21 = arith.addi %19, %20 : vector<8x1xi32>
    %22 = vector.broadcast %21 : vector<8x1xi32> to vector<8x128xi32>
    %23 = arith.cmpi eq, %1, %22 : vector<8x128xi32>
    %24 = arith.ori %18, %23 : vector<8x128xi1>
    %25 = arith.extui %24 : vector<8x128xi1> to vector<8x128xi32>
    %26 = arith.sitofp %25 : vector<8x128xi32> to vector<8x128xf32>
    %27 = vector.extract_strided_slice %0 {offsets = [0, 8], sizes = [8, 1], strides = [1, 1]} : vector<8x20xi32> to vector<8x1xi32>
    %c0_i32_1 = arith.constant 0 : i32
    %28 = vector.broadcast %c0_i32_1 : i32 to vector<8x1xi32>
    %29 = arith.addi %27, %28 : vector<8x1xi32>
    %30 = vector.broadcast %29 : vector<8x1xi32> to vector<8x128xi32>
    %31 = arith.cmpi eq, %1, %30 : vector<8x128xi32>
    %32 = vector.extract_strided_slice %0 {offsets = [0, 7], sizes = [8, 1], strides = [1, 1]} : vector<8x20xi32> to vector<8x1xi32>
    %c24_i32_2 = arith.constant 24 : i32
    %33 = vector.broadcast %c24_i32_2 : i32 to vector<8x1xi32>
    %34 = arith.addi %32, %33 : vector<8x1xi32>
    %35 = vector.broadcast %34 : vector<8x1xi32> to vector<8x128xi32>
    %36 = arith.cmpi eq, %1, %35 : vector<8x128xi32>
    %37 = arith.ori %31, %36 : vector<8x128xi1>
    %38 = vector.extract_strided_slice %0 {offsets = [0, 6], sizes = [8, 1], strides = [1, 1]} : vector<8x20xi32> to vector<8x1xi32>
    %c31_i32_3 = arith.constant 31 : i32
    %39 = vector.broadcast %c31_i32_3 : i32 to vector<8x1xi32>
    %40 = arith.addi %38, %39 : vector<8x1xi32>
    %41 = vector.broadcast %40 : vector<8x1xi32> to vector<8x128xi32>
    %42 = arith.cmpi eq, %1, %41 : vector<8x128xi32>
    %43 = arith.ori %37, %42 : vector<8x128xi1>
    %44 = vector.extract_strided_slice %0 {offsets = [0, 5], sizes = [8, 1], strides = [1, 1]} : vector<8x20xi32> to vector<8x1xi32>
    %c63_i32_4 = arith.constant 63 : i32
    %45 = vector.broadcast %c63_i32_4 : i32 to vector<8x1xi32>
    %46 = arith.addi %44, %45 : vector<8x1xi32>
    %47 = vector.broadcast %46 : vector<8x1xi32> to vector<8x128xi32>
    %48 = arith.cmpi eq, %1, %47 : vector<8x128xi32>
    %49 = arith.ori %43, %48 : vector<8x128xi1>
    %50 = arith.extui %49 : vector<8x128xi1> to vector<8x128xi32>
    %51 = arith.sitofp %50 : vector<8x128xi32> to vector<8x128xf32>
    %52 = vector.extract_strided_slice %0 {offsets = [0, 13], sizes = [8, 1], strides = [1, 1]} : vector<8x20xi32> to vector<8x1xi32>
    %c0_i32_5 = arith.constant 0 : i32
    %53 = vector.broadcast %c0_i32_5 : i32 to vector<8x1xi32>
    %54 = arith.addi %52, %53 : vector<8x1xi32>
    %55 = vector.broadcast %54 : vector<8x1xi32> to vector<8x128xi32>
    %56 = arith.cmpi eq, %1, %55 : vector<8x128xi32>
    %57 = vector.extract_strided_slice %0 {offsets = [0, 12], sizes = [8, 1], strides = [1, 1]} : vector<8x20xi32> to vector<8x1xi32>
    %c24_i32_6 = arith.constant 24 : i32
    %58 = vector.broadcast %c24_i32_6 : i32 to vector<8x1xi32>
    %59 = arith.addi %57, %58 : vector<8x1xi32>
    %60 = vector.broadcast %59 : vector<8x1xi32> to vector<8x128xi32>
    %61 = arith.cmpi eq, %1, %60 : vector<8x128xi32>
    %62 = arith.ori %56, %61 : vector<8x128xi1>
    %63 = vector.extract_strided_slice %0 {offsets = [0, 11], sizes = [8, 1], strides = [1, 1]} : vector<8x20xi32> to vector<8x1xi32>
    %c31_i32_7 = arith.constant 31 : i32
    %64 = vector.broadcast %c31_i32_7 : i32 to vector<8x1xi32>
    %65 = arith.addi %63, %64 : vector<8x1xi32>
    %66 = vector.broadcast %65 : vector<8x1xi32> to vector<8x128xi32>
    %67 = arith.cmpi eq, %1, %66 : vector<8x128xi32>
    %68 = arith.ori %62, %67 : vector<8x128xi1>
    %69 = vector.extract_strided_slice %0 {offsets = [0, 10], sizes = [8, 1], strides = [1, 1]} : vector<8x20xi32> to vector<8x1xi32>
    %c63_i32_8 = arith.constant 63 : i32
    %70 = vector.broadcast %c63_i32_8 : i32 to vector<8x1xi32>
    %71 = arith.addi %69, %70 : vector<8x1xi32>
    %72 = vector.broadcast %71 : vector<8x1xi32> to vector<8x128xi32>
    %73 = arith.cmpi eq, %1, %72 : vector<8x128xi32>
    %74 = arith.ori %68, %73 : vector<8x128xi1>
    %75 = arith.extui %74 : vector<8x128xi1> to vector<8x128xi32>
    %76 = arith.sitofp %75 : vector<8x128xi32> to vector<8x128xf32>
    %77 = vector.extract_strided_slice %0 {offsets = [0, 18], sizes = [8, 1], strides = [1, 1]} : vector<8x20xi32> to vector<8x1xi32>
    %c0_i32_9 = arith.constant 0 : i32
    %78 = vector.broadcast %c0_i32_9 : i32 to vector<8x1xi32>
    %79 = arith.addi %77, %78 : vector<8x1xi32>
    %80 = vector.broadcast %79 : vector<8x1xi32> to vector<8x128xi32>
    %81 = arith.cmpi eq, %1, %80 : vector<8x128xi32>
    %82 = vector.extract_strided_slice %0 {offsets = [0, 17], sizes = [8, 1], strides = [1, 1]} : vector<8x20xi32> to vector<8x1xi32>
    %c24_i32_10 = arith.constant 24 : i32
    %83 = vector.broadcast %c24_i32_10 : i32 to vector<8x1xi32>
    %84 = arith.addi %82, %83 : vector<8x1xi32>
    %85 = vector.broadcast %84 : vector<8x1xi32> to vector<8x128xi32>
    %86 = arith.cmpi eq, %1, %85 : vector<8x128xi32>
    %87 = arith.ori %81, %86 : vector<8x128xi1>
    %88 = vector.extract_strided_slice %0 {offsets = [0, 16], sizes = [8, 1], strides = [1, 1]} : vector<8x20xi32> to vector<8x1xi32>
    %c31_i32_11 = arith.constant 31 : i32
    %89 = vector.broadcast %c31_i32_11 : i32 to vector<8x1xi32>
    %90 = arith.addi %88, %89 : vector<8x1xi32>
    %91 = vector.broadcast %90 : vector<8x1xi32> to vector<8x128xi32>
    %92 = arith.cmpi eq, %1, %91 : vector<8x128xi32>
    %93 = arith.ori %87, %92 : vector<8x128xi1>
    %94 = vector.extract_strided_slice %0 {offsets = [0, 15], sizes = [8, 1], strides = [1, 1]} : vector<8x20xi32> to vector<8x1xi32>
    %c63_i32_12 = arith.constant 63 : i32
    %95 = vector.broadcast %c63_i32_12 : i32 to vector<8x1xi32>
    %96 = arith.addi %94, %95 : vector<8x1xi32>
    %97 = vector.broadcast %96 : vector<8x1xi32> to vector<8x128xi32>
    %98 = arith.cmpi eq, %1, %97 : vector<8x128xi32>
    %99 = arith.ori %93, %98 : vector<8x128xi1>
    %100 = arith.extui %99 : vector<8x128xi1> to vector<8x128xi32>
    %101 = arith.sitofp %100 : vector<8x128xi32> to vector<8x128xf32>
    %102 = tpu.concatenate %26, %51, %76, %101 in 1 : vector<8x128xf32>, vector<8x128xf32>, vector<8x128xf32>, vector<8x128xf32> -> vector<8x512xf32>
    %c0_13 = arith.constant 0 : index
    %c0_14 = arith.constant 0 : index
    %103 = vector.load %arg2[%c0_13, %c0_14] : memref<512x128xf32, #tpu.memory_space<vmem>>, vector<512x128xf32>
    %cst = arith.constant dense<0.000000e+00> : vector<8x128xf32>
    %104 = tpu.matmul %102, %103, %cst {dimension_numbers = #tpu.dot_dimension_numbers<[1], [0], [0], [1], [0, 0, 1, 1], [], []>, precision = #tpu.contract_precision<fp32>} : vector<8x512xf32>, vector<512x128xf32>, vector<8x128xf32> -> vector<8x128xf32>
    %c0_15 = arith.constant 0 : index
    %c0_16 = arith.constant 0 : index
    %105 = vector.load %arg3[%c0_15, %c0_16] : memref<8x128xf32, #tpu.memory_space<vmem>>, vector<8x128xf32>
    tpu.vector_store %arg3[%c0_15, %c0_16], %104 {strides = array<i32>} : memref<8x128xf32, #tpu.memory_space<vmem>>, vector<8x128xf32>,
    return
  }
  func.func @transform_0(%arg0: i32) -> (i32, i32) {
    %c0_i32 = arith.constant 0 : i32
    %c0_i32_0 = arith.constant 0 : i32
    return %arg0, %c0_i32 : i32, i32
  }
  func.func @transform_1(%arg0: i32) -> (i32, i32) {
    %c0_i32 = arith.constant 0 : i32
    %c0_i32_0 = arith.constant 0 : i32
    %c0_i32_1 = arith.constant 0 : i32
    return %c0_i32, %c0_i32_0 : i32, i32
  }
  func.func @transform_2(%arg0: i32) -> (i32, i32) {
    %c0_i32 = arith.constant 0 : i32
    %c0_i32_0 = arith.constant 0 : i32
    return %arg0, %c0_i32 : i32, i32
  }
}

</mosaic_0001>

<bundles_post_ra>
// kernel: tpu_custom_call.1
= control target key start
LH: loop header
LB: loop body
LE: loop exit
PB: predicated region body
PF: predicated region fallthrough
CT: control target
= control target key end

     0   :  { %7 = vsyncpa [#allocation3], 0  ;;  %s3781_s0 = inlined_call_operand.hbm [shape: s32[8,20], index: 0, kind: input, shape index: {}]   ;;  %s3782_s1 = inlined_call_operand.hbm [shape: f32[512,128], index: 1, kind: input, shape index: {}]   ;;  %s3783_s2 = inlined_call_operand.hbm [shape: f32[8,128], index: 2, kind: output, shape index: {}]  }
   0x1   :  { %8 = vsyncpa [#allocation6], 0 }
   0x2   :  { %9 = vsyncpa [#allocation4], 0  ;;  %s2474_s9 = smov [#allocation2]   ;;  %s2475_s11 = smov [#allocation5]  }
   0x3   :  { %s16_s10 = sshll.u32 %s2474_s9, 4  ;;  %s25_s12 = sshll.u32 %s2475_s11, 4  ;;  %s17_s10 = int_to_ptr.vmem [resolvable:$true] %s16_s10  ;;  %s26_s12 = int_to_ptr.vmem [resolvable:$true] %s25_s12 }
   0x4   :  { %s2416_s13 = scalar_lea.vmem %s17_s10, 128  ;;  %p2421_p1 = scmp.lt.s32.totalorder %s17_s10, %s17_s10 }
   0x5   :  { %p2417_p0 = scmp.ne.s32.totalorder %s17_s10, %s2416_s13  ;;  %p2422_p2 = scmp.lt.s32.totalorder %s2416_s13, %s2416_s13 }
   0x7   :  { %p2423_p3 = por %p2422_p2, %p2421_p1 }
   0x9   :  { %p2424_p4 = pnand %p2423_p3, %p2417_p0 }
   0xb   :  { %2427 = shalt.err (!%p2424_p4)
}
   0xc   :  { %19 = dma.hbm_to_vmem [thread:$0]  %s3781_s0, 128, %s17_s10, [#allocation3]  }
   0xd   :  { %s2436_s16 = scalar_lea.vmem %s26_s12, 8192  ;;  %p2441_p6 = scmp.lt.s32.totalorder %s26_s12, %s26_s12 }
   0xe   :  { %p2437_p5 = scmp.ne.s32.totalorder %s26_s12, %s2436_s16  ;;  %p2442_p7 = scmp.lt.s32.totalorder %s2436_s16, %s2436_s16 }
  0x10   :  { %p2443_p8 = por %p2442_p7, %p2441_p6 }
  0x12   :  { %p2444_p9 = pnand %p2443_p8, %p2437_p5 }
  0x14   :  { %2447 = shalt.err (!%p2444_p9)
}
  0x15   :  { %s2476_s17 = smov 128   ;;  %s2477_s18 = smov 8  }
  0x16   :  { %31 = dma.hbm_to_vmem [thread:$0]  %s3782_s1, 8192, %s26_s12, [#allocation6], %s2476_s17, %s2476_s17, %s2477_s18  }
  0x17   :  { %2468 = dma.done.wait [#allocation3], 128  }
  0x18   :  { %2469 = vsyncadd [#allocation3], 4294967168 }
  0x19   :  { %2470 = dma.done.wait [#allocation6], 8192  }
  0x1a   :  { %2471 = vsyncadd [#allocation6], 4294959104  ;;  %v2478_v0 = vmov 8   ;;  %v2479_v1 = vmov 3   ;;  %v2518_v2 = vld [vmem:[#allocation2] sm:$0xff]  ;;  %v158_v9 = vld [vmem:[#allocation5 + $0xf0] sm:$0xff] }
  0x1b   :  { %2392 = vset.pattern.permute.xlu0 %v2478_v0  ;;  %2393 = vset.pattern.permute.xlu1 %v2479_v1  ;;  %v159_v3 = vld [vmem:[#allocation5 + $0xf8] sm:$0xff]  ;;  %v2523_v5 = vadd.s32 24, %v2518_v2  ;;  %v2526_v6 = vadd.s32 31, %v2518_v2  ;;  %v2529_v7 = vadd.s32 63, %v2518_v2  ;;  %v142_v10 = vld [vmem:[#allocation5 + $0x70] sm:$0xff]  ;;  %v2535_v12 = vand.u32 4294901760, %v158_v9 }
  0x1c   :  { %v143_v4 = vld [vmem:[#allocation5 + $0x78] sm:$0xff]  ;;  %42 = vperm.xlu1 %2393, %v2518_v2   ;;  %66 = vperm.xlu0 %2392, %v2518_v2   ;;  %v2531_v8 = vand.u32 4294901760, %v159_v3  ;;  %v2537_v13 = vand.u32 4294901760, %v142_v10  ;;  %v157_v14 = vld [vmem:[#allocation5 + $0xe8] sm:$0xff]  ;;  %v156_v16 = vld [vmem:[#allocation5 + $0xe0] sm:$0xff]  ;;  %v2480_v26 = vmov 2  }
  0x1d   :  { %v2533_v11 = vand.u32 4294901760, %v143_v4  ;;  %v141_v15 = vld [vmem:[#allocation5 + $0x68] sm:$0xff]  ;;  %v2542_v18 = vand.u32 4294901760, %v157_v14  ;;  %v2546_v20 = vand.u32 4294901760, %v156_v16  ;;  %v140_v21 = vld [vmem:[#allocation5 + $0x60] sm:$0xff]  ;;  %v2553_v23 = vsub.f32 %v158_v9, %v2535_v12  ;;  %v155_v44 = vld [vmem:[#allocation5 + $0xd8] sm:$0xff] }
  0x1e   :  { %v2540_v17 = vsub.f32 %v159_v3, %v2531_v8  ;;  %v2544_v19 = vand.u32 4294901760, %v141_v15  ;;  %1949 = vmatprep.subr.mxu0 %v2531_v8  ;;  %v2556_v24 = vsub.f32 %v142_v10, %v2537_v13  ;;  %v2558_v25 = vand.u32 4294901760, %v140_v21  ;;  %v139_v49 = vld [vmem:[#allocation5 + $0x58] sm:$0xff]  ;;  %v154_v50 = vld [vmem:[#allocation5 + $0xd0] sm:$0xff]  ;;  %v153_v57 = vld [vmem:[#allocation5 + $0xc8] sm:$0xff]  ;;  %s2496_s0 = smov [#allocation7]  }
  0x1f   :  { %v2550_v22 = vsub.f32 %v143_v4, %v2533_v11  ;;  %1950 = vmatpush3.msra.mxu0 %v2533_v11  ;;  %v2481_v27 = vmov 7   ;;  %v2563_v29 = vsub.f32 %v157_v14, %v2542_v18  ;;  %v2569_v31 = vsub.f32 %v156_v16, %v2546_v20  ;;  %v138_v51 = vld [vmem:[#allocation5 + $0x50] sm:$0xff]  ;;  %v137_v58 = vld [vmem:[#allocation5 + $0x48] sm:$0xff]  ;;  %v152_v59 = vld [vmem:[#allocation5 + $0xc0] sm:$0xff]  ;;  %s1923_s1 = sshll.u32 %s2496_s0, 4  ;;  %s1924_s1 = int_to_ptr.vmem [resolvable:$true] %s1923_s1 }
  0x20   :  { %2395 = vset.pattern.permute.xlu1 %v2480_v26  ;;  %2394 = vset.pattern.permute.xlu0 %v2481_v27  ;;  %v3799_v28 = vand.u32 4294901760, %v2540_v17  ;;  %v2566_v30 = vsub.f32 %v141_v15, %v2544_v19  ;;  %v3796_v33 = vand.u32 4294901760, %v2553_v23  ;;  %v3794_v34 = vand.u32 4294901760, %v2556_v24  ;;  %v136_v0 = vld [vmem:[#allocation5 + $0x40] sm:$0xff]  ;;  %s2448_s21 = scalar_lea.vmem %s1924_s1, 128  ;;  %p2453_p11 = scmp.lt.s32.totalorder %s1924_s1, %s1924_s1 }
  0x21   :  { %47 = vperm.xlu1 %2395, %v2523_v5   ;;  %70 = vperm.xlu0 %2394, %v2523_v5   ;;  %v3798_v32 = vand.u32 4294901760, %v2550_v22  ;;  %v2577_v35 = vsub.f32 %v140_v21, %v2558_v25  ;;  %v3793_v37 = vand.u32 4294901760, %v2563_v29  ;;  %v3790_v39 = vand.u32 4294901760, %v2569_v31  ;;  %p2449_p10 = scmp.ne.s32.totalorder %s1924_s1, %s2448_s21  ;;  %p2454_p12 = scmp.lt.s32.totalorder %s2448_s21, %s2448_s21 }
  0x22   :  { %v420_v36 = vsub.f32 %v2540_v17, %v3799_v28  ;;  %v3792_v38 = vand.u32 4294901760, %v2566_v30  ;;  %1951 = vmatprep.subr.mxu0 %v2535_v12  ;;  %v427_v41 = vsub.f32 %v2553_v23, %v3796_v33  ;;  %v315_v42 = vsub.f32 %v2556_v24, %v3794_v34  ;;  %v148_v34 = vld [vmem:[#allocation5 + $0xa0] sm:$0xff] }
  0x23   :  { %v308_v40 = vsub.f32 %v2550_v22, %v3798_v32  ;;  %v3788_v43 = vand.u32 4294901760, %v2577_v35  ;;  %1952 = vmatpush3.msra.mxu0 %v2537_v13  ;;  %v434_v46 = vsub.f32 %v2563_v29, %v3793_v37  ;;  %v2608_v48 = vsub.f32 %v2569_v31, %v3790_v39  ;;  %v133_v37 = vld [vmem:[#allocation5 + $0x28] sm:$0xff]  ;;  %p2455_p13 = por %p2454_p12, %p2453_p11 }
  0x24   :  { %v421_v45 = vand.u32 4294901760, %v420_v36  ;;  %v2603_v47 = vsub.f32 %v2566_v30, %v3792_v38  ;;  %1953 = vmatprep.subr.mxu0 %v2542_v18  ;;  %v2482_v52 = vmov 6   ;;  %v2483_v53 = vmov 1  }
  0x25   :  { %2396 = vset.pattern.permute.xlu1 %v2482_v52  ;;  %2397 = vset.pattern.permute.xlu0 %v2483_v53  ;;  %v309_v54 = vand.u32 4294901760, %v308_v40  ;;  %v428_v55 = vand.u32 4294901760, %v427_v41  ;;  %v316_v56 = vand.u32 4294901760, %v315_v42  ;;  %v435_v60 = vand.u32 4294901760, %v434_v46  ;;  %p2456_p0 = pnand %p2455_p13, %p2449_p10 }
  0x26   :  { %75 = vperm.xlu1 %2396, %v2526_v6   ;;  %53 = vperm.xlu0 %2397, %v2526_v6   ;;  %v323_v61 = vand.u32 4294901760, %v2603_v47  ;;  %v2617_v62 = vsub.f32 %v2577_v35, %v3788_v43  ;;  %v2619_v63 = vand.u32 4294901760, %v155_v44  ;;  %v442_v1 = vand.u32 4294901760, %v2608_v48 }
  0x27   :  { %1984 = vmatprep.subr.mxu1 %v421_v45  ;;  %v2622_v3 = vand.u32 4294901760, %v139_v49  ;;  %v2624_v4 = vand.u32 4294901760, %v154_v50  ;;  %v2626_v9 = vand.u32 4294901760, %v138_v51  ;;  %1954 = vmatpush3.msra.mxu0 %v2544_v19  ;;  %v2632_v14 = vand.u32 4294901760, %v153_v57 }
  0x28   :  { %1985 = vmatpush3.msra.mxu1 %v309_v54  ;;  %v2630_v10 = vsub.f32 %v155_v44, %v2619_v63  ;;  %v2634_v15 = vand.u32 4294901760, %v137_v58  ;;  %v2636_v16 = vand.u32 4294901760, %v152_v59  ;;  %1955 = vmatprep.subr.mxu0 %v2546_v20  ;;  %v2648_v36 = vand.u32 4294901760, %v136_v0 }
  0x29   :  { %1986 = vmatprep.subr.mxu1 %v428_v55  ;;  %v2640_v21 = vsub.f32 %v139_v49, %v2622_v3  ;;  %v2643_v26 = vsub.f32 %v154_v50, %v2624_v4  ;;  %v2646_v27 = vsub.f32 %v138_v51, %v2626_v9  ;;  %1956 = vmatpush3.msra.mxu0 %v2558_v25  ;;  %v2484_v40 = vmov 5  }
  0x2a   :  { %2398 = vset.pattern.permute.xlu1 %v2484_v40  ;;  %v2485_v41 = vmov 18   ;;  %v3787_v42 = vand.u32 4294901760, %v2630_v10  ;;  %v2653_v44 = vsub.f32 %v153_v57, %v2632_v14  ;;  %v2656_v45 = vsub.f32 %v137_v58, %v2634_v15  ;;  %1987 = vmatpush3.msra.mxu1 %v316_v56  ;;  %v135_v40 = vld [vmem:[#allocation5 + $0x38] sm:$0xff] }
  0x2b   :  { %3920 = vst [vmem:[#allocation11_spill] sm:$0xff] %v2643_v26  ;;  %3921 = vst [vmem:[#allocation12_spill] sm:$0xff] %v2646_v27  ;;  %2400 = vset.pattern.permute.xlu0 %v2485_v41  ;;  %v2659_v46 = vsub.f32 %v152_v59, %v2636_v16  ;;  %80 = vperm.xlu1 %2398, %v2529_v7   ;;  %v3786_v47 = vand.u32 4294901760, %v2640_v21  ;;  %v3784_v49 = vand.u32 4294901760, %v2643_v26  ;;  %v3785_v50 = vand.u32 4294901760, %v2646_v27 }
  0x2c   :  { %3922 = vst [vmem:[#allocation13_spill] sm:$0xff] %v2653_v44  ;;  %3923 = vst [vmem:[#allocation14_spill] sm:$0xff] %v2656_v45  ;;  %108 = vperm.xlu0 %2400, %v2518_v2   ;;  %v2667_v51 = vsub.f32 %v136_v0, %v2648_v36  ;;  %v448_v52 = vsub.f32 %v2630_v10, %v3787_v42  ;;  %v3789_v53 = vand.u32 4294901760, %v2653_v44  ;;  %v3791_v54 = vand.u32 4294901760, %v2656_v45  ;;  %v151_v0 = vld [vmem:[#allocation5 + $0xb8] sm:$0xff] }
  0x2d   :  { %3924 = vst [vmem:[#allocation15_spill] sm:$0xff] %v2659_v46  ;;  %v3795_v55 = vand.u32 4294901760, %v2659_v46  ;;  %1957 = vmatprep.subr.mxu0 %v2619_v63  ;;  %1988 = vmatprep.subr.mxu1 %v435_v60  ;;  %v2679_v57 = vsub.f32 %v2640_v21, %v3786_v47  ;;  %v2684_v56 = vsub.f32 %v2643_v26, %v3784_v49  ;;  %v330_v60 = vand.u32 4294901760, %v2617_v62  ;;  %v150_v47 = vld [vmem:[#allocation5 + $0xb0] sm:$0xff]  ;;  %v149_v62 = vld [vmem:[#allocation5 + $0xa8] sm:$0xff] }
  0x2e   :  { %3925 = vst [vmem:[#allocation16_spill] sm:$0xff] %v2667_v51  ;;  %v2689_v58 = vsub.f32 %v2646_v27, %v3785_v50  ;;  %v3797_v59 = vand.u32 4294901760, %v2667_v51  ;;  %1958 = vmatpush3.msra.mxu0 %v2622_v3  ;;  %1989 = vmatpush3.msra.mxu1 %v323_v61  ;;  %v2697_v41 = vsub.f32 %v2653_v44, %v3789_v53  ;;  %v134_v61 = vld [vmem:[#allocation5 + $0x30] sm:$0xff]  ;;  %v2486_v42 = vmov 0  }
  0x2f   :  { %v2702_v49 = vsub.f32 %v2656_v45, %v3791_v54  ;;  %v2707_v50 = vsub.f32 %v2659_v46, %v3795_v55  ;;  %1959 = vmatprep.subr.mxu0 %v2624_v4  ;;  %2399 = vset.pattern.permute.xlu1 %v2486_v42  ;;  %v2487_v43 = vmov 12   ;;  %v449_v53 = vand.u32 4294901760, %v448_v52  ;;  %v132_v52 = vld [vmem:[#allocation5 + $0x20] sm:$0xff]  ;;  %v147_v45 = vld [vmem:[#allocation5 + $0x98] sm:$0xff] }
  0x30   :  { %2403 = vset.pattern.permute.xlu0 %v2487_v43  ;;  %v337_v39 = vand.u32 4294901760, %v2679_v57  ;;  %v456_v54 = vand.u32 4294901760, %v2684_v56  ;;  %v344_v38 = vand.u32 4294901760, %v2689_v58  ;;  %59 = vperm.xlu1 %2399, %v2529_v7   ;;  %v463_v55 = vand.u32 4294901760, %v2697_v41 }
  0x31   :  { %91 = vperm.xlu0 %2403, %v2523_v5   ;;  %v2720_v43 = vsub.f32 %v2667_v51, %v3797_v59  ;;  %v2722_v42 = vand.u32 4294901760, %v151_v0  ;;  %1990 = vmatprep.subr.mxu1 %v442_v1  ;;  %v2727_v56 = vand.u32 4294901760, %v135_v40  ;;  %v2729_v58 = vand.u32 4294901760, %v150_v47 }
  0x32   :  { %v2731_v41 = vand.u32 4294901760, %v134_v61  ;;  %1960 = vmatpush3.msra.mxu0 %v2626_v9  ;;  %1991 = vmatpush3.msra.mxu1 %v330_v60  ;;  %v2737_v32 = vand.u32 4294901760, %v149_v62  ;;  %v2740_v48 = vand.u32 4294901760, %v133_v37  ;;  %v2742_v1 = vand.u32 4294901760, %v148_v34 }
  0x33   :  { %3926 = vst [vmem:[#allocation17_spill] sm:$0xff] %v2729_v58  ;;  %v2735_v59 = vsub.f32 %v151_v0, %v2722_v42  ;;  %1961 = vmatprep.subr.mxu0 %v2632_v14  ;;  %1992 = vmatprep.subr.mxu1 %v449_v53  ;;  %v2745_v28 = vsub.f32 %v135_v40, %v2727_v56  ;;  %v2754_v0 = vand.u32 4294901760, %v132_v52  ;;  %v2488_v33 = vmov 17  }
  0x34   :  { %3927 = vst [vmem:[#allocation18_spill] sm:$0xff] %v2731_v41  ;;  %v2748_v57 = vsub.f32 %v150_v47, %v2729_v58  ;;  %v2751_v60 = vsub.f32 %v134_v61, %v2731_v41  ;;  %1962 = vmatpush3.msra.mxu0 %v2634_v15  ;;  %2401 = vset.pattern.permute.xlu1 %v2488_v33  ;;  %v2489_v51 = vmov 15   ;;  %v2815_v26 = vand.u32 4294901760, %v147_v45 }
  0x35   :  { %3928 = vst [vmem:[#allocation19_spill] sm:$0xff] %v2735_v59  ;;  %3929 = vst [vmem:[#allocation20_spill] sm:$0xff] %v2745_v28  ;;  %2406 = vset.pattern.permute.xlu0 %v2489_v51  ;;  %v2758_v53 = vsub.f32 %v149_v62, %v2737_v32  ;;  %v2761_v40 = vsub.f32 %v133_v37, %v2740_v48  ;;  %v2764_v47 = vsub.f32 %v148_v34, %v2742_v1  ;;  %v131_v34 = vld [vmem:[#allocation5 + $0x18] sm:$0xff] }
  0x36   :  { %3930 = vst [vmem:[#allocation21_spill] sm:$0xff] %v2748_v57  ;;  %3931 = vst [vmem:[#allocation22_spill] sm:$0xff] %v2751_v60  ;;  %112 = vperm.xlu1 %2401, %v2523_v5   ;;  %122 = vperm.xlu0 %2406, %v2529_v7   ;;  %v3806_v61 = vand.u32 4294901760, %v2745_v28  ;;  %v3809_v33 = vand.u32 4294901760, %v2748_v57  ;;  %v2772_v46 = vsub.f32 %v132_v52, %v2754_v0  ;;  %v3936_v37 = vand.u32 4294901760, %v2735_v59 }
  0x37   :  { %3932 = vst [vmem:[#allocation23_spill] sm:$0xff] %v2758_v53  ;;  %3933 = vst [vmem:[#allocation24_spill] sm:$0xff] %v2761_v40  ;;  %1993 = vmatpush3.msra.mxu1 %v337_v39  ;;  %1963 = vmatprep.subr.mxu0 %v2636_v16  ;;  %v3937_v52 = vand.u32 4294901760, %v2751_v60  ;;  %v3938_v5 = vand.u32 4294901760, %v2758_v53 }
  0x38   :  { %3934 = vst [vmem:[#allocation25_spill] sm:$0xff] %v2764_v47  ;;  %3935 = vst [vmem:[#allocation26_spill] sm:$0xff] %v2772_v46  ;;  %v476_v62 = vsub.f32 %v2735_v59, %v3936_v37  ;;  %1994 = vmatprep.subr.mxu1 %v456_v54  ;;  %v364_v51 = vsub.f32 %v2745_v28, %v3806_v61  ;;  %v483_v39 = vsub.f32 %v2748_v57, %v3809_v33 }
  0x39   :  { %v371_v37 = vsub.f32 %v2751_v60, %v3937_v52  ;;  %1964 = vmatpush3.msra.mxu0 %v2648_v36  ;;  %1995 = vmatpush3.msra.mxu1 %v344_v38  ;;  %v358_v54 = vand.u32 4294901760, %v2720_v43  ;;  %v490_v61 = vsub.f32 %v2758_v53, %v3938_v5  ;;  %v3939_v28 = vand.u32 4294901760, %v2761_v40  ;;  %v146_v38 = vld [vmem:[#allocation5 + $0x90] sm:$0xff] }
  0x3a   :  { %v3940_v57 = vand.u32 4294901760, %v2764_v47  ;;  %1965 = vmatprep.subr.mxu0 %v2722_v42  ;;  %v2490_v60 = vmov 13   ;;  %1996 = vmatprep.subr.mxu1 %v463_v55  ;;  %v477_v43 = vand.u32 4294901760, %v476_v62  ;;  %v365_v59 = vand.u32 4294901760, %v364_v51  ;;  %v129_v55 = vld [vmem:[#allocation5 + $0x8] sm:$0xff] }
  0x3b   :  { %v2799_v33 = vsub.f32 %v2761_v40, %v3939_v28  ;;  %2402 = vset.pattern.permute.xlu1 %v2490_v60  ;;  %v3941_v5 = vand.u32 4294901760, %v2772_v46  ;;  %v130_v28 = vld [vmem:[#allocation5 + $0x10] sm:$0xff]  ;;  %v145_v40 = vld [vmem:[#allocation5 + $0x88] sm:$0xff]  ;;  %v372_v44 = vand.u32 4294901760, %v371_v37  ;;  %v491_v27 = vand.u32 4294901760, %v490_v61  ;;  %v144_v60 = vld [vmem:[#allocation5 + $0x80] sm:$0xff]  ;;  %1966 = vmatpush3.msra.mxu0 %v2727_v56 }
  0x3c   :  { %v2804_v52 = vsub.f32 %v2764_v47, %v3940_v57  ;;  %87 = vperm.xlu1 %2402, %v2518_v2   ;;  %v3942_v57 = vand.u32 4294901760, %v2702_v49  ;;  %v484_v47 = vand.u32 4294901760, %v483_v39  ;;  %v3943_v51 = vand.u32 4294901760, %v2707_v50  ;;  %v128_v49 = vld [vmem:[#allocation5] sm:$0xff]  ;;  %1967 = vmatprep.subr.mxu0 %v2729_v58 }
  0x3d   :  { %v2810_v53 = vsub.f32 %v2772_v46, %v3941_v5  ;;  %v379_v62 = vand.u32 4294901760, %v2799_v33  ;;  %v2821_v46 = vand.u32 4294901760, %v131_v34  ;;  %v2824_v2 = vand.u32 4294901760, %v146_v38  ;;  %1968 = vmatpush3.msra.mxu0 %v2731_v41 }
  0x3e   :  { %1997 = vmatpush3.msra.mxu1 %v3942_v57  ;;  %v498_v5 = vand.u32 4294901760, %v2804_v52  ;;  %v2828_v39 = vsub.f32 %v147_v45, %v2815_v26  ;;  %v2831_v50 = vand.u32 4294901760, %v130_v28  ;;  %v2833_v33 = vand.u32 4294901760, %v145_v40  ;;  %1969 = vmatprep.subr.mxu0 %v2737_v32 }
  0x3f   :  { %1998 = vmatprep.subr.mxu1 %v3943_v51  ;;  %3944 = vst [vmem:[#allocation27_spill] sm:$0xff] %v2824_v2  ;;  %v386_v61 = vand.u32 4294901760, %v2810_v53  ;;  %v2836_v37 = vsub.f32 %v131_v34, %v2821_v46  ;;  %v2839_v52 = vsub.f32 %v146_v38, %v2824_v2  ;;  %v2844_v53 = vand.u32 4294901760, %v144_v60  ;;  %1970 = vmatpush3.msra.mxu0 %v2740_v48 }
  0x40   :  { %1999 = vmatpush3.msra.mxu1 %v358_v54  ;;  %v2842_v54 = vand.u32 4294901760, %v129_v55  ;;  %v2491_v45 = vmov 16   ;;  %v3834_v57 = vand.u32 4294901760, %v2828_v39  ;;  %v2848_v51 = vsub.f32 %v130_v28, %v2831_v50  ;;  %1971 = vmatprep.subr.mxu0 %v2742_v1 }
  0x41   :  { %2000 = vmatprep.subr.mxu1 %v477_v43  ;;  %3945 = vst [vmem:[#allocation28_spill] sm:$0xff] %v2836_v37  ;;  %3946 = vst [vmem:[#allocation29_spill] sm:$0xff] %v2839_v52  ;;  %2404 = vset.pattern.permute.xlu1 %v2491_v45  ;;  %v2851_v34 = vsub.f32 %v145_v40, %v2833_v33  ;;  %v2853_v43 = vand.u32 4294901760, %v128_v49  ;;  %v3835_v38 = vand.u32 4294901760, %v2836_v37  ;;  %v3836_v41 = vand.u32 4294901760, %v2839_v52 }
  0x42   :  { %3947 = vst [vmem:[#allocation30_spill] sm:$0xff] %v2844_v53  ;;  %2001 = vmatpush3.msra.mxu1 %v365_v59  ;;  %117 = vperm.xlu1 %2404, %v2526_v6   ;;  %v2859_v45 = vsub.f32 %v129_v55, %v2842_v54  ;;  %v2862_v59 = vsub.f32 %v144_v60, %v2844_v53  ;;  %v3841_v28 = vand.u32 4294901760, %v2848_v51 }
  0x43   :  { %3948 = vst [vmem:[#allocation31_spill] sm:$0xff] %v2851_v34  ;;  %3949 = vst [vmem:[#allocation32_spill] sm:$0xff] %v2853_v43  ;;  %2002 = vmatprep.subr.mxu1 %v484_v47  ;;  %v504_v40 = vsub.f32 %v2828_v39, %v3834_v57  ;;  %v2871_v47 = vsub.f32 %v128_v49, %v2853_v43  ;;  %v392_v55 = vsub.f32 %v2836_v37, %v3835_v38 }
  0x44   :  { %3950 = vst [vmem:[#allocation33_spill] sm:$0xff] %v2859_v45  ;;  %3951 = vst [vmem:[#allocation34_spill] sm:$0xff] %v2862_v59  ;;  %2003 = vmatpush3.msra.mxu1 %v372_v44  ;;  %v511_v44 = vsub.f32 %v2839_v52, %v3836_v41  ;;  %v3845_v57 = vand.u32 4294901760, %v2862_v59  ;;  %v3953_v49 = vand.u32 4294901760, %v2851_v34  ;;  %v2492_v52 = vmov 11   ;;  %1972 = vmatpush3.msra.mxu0 %v2754_v0 }
  0x45   :  { %3952 = vst [vmem:[#allocation35_spill] sm:$0xff] %v2871_v47  ;;  %2004 = vmatprep.subr.mxu1 %v491_v27  ;;  %v505_v58 = vand.u32 4294901760, %v504_v40  ;;  %v399_v27 = vsub.f32 %v2848_v51, %v3841_v28  ;;  %v3844_v41 = vand.u32 4294901760, %v2871_v47  ;;  %v393_v60 = vand.u32 4294901760, %v392_v55  ;;  %1973 = vmatprep.subr.mxu0 %v2815_v26 }
  0x46   :  { %2005 = vmatpush3.msra.mxu1 %v379_v62  ;;  %v518_v38 = vsub.f32 %v2851_v34, %v3953_v49  ;;  %2405 = vset.pattern.permute.xlu1 %v2492_v52  ;;  %v512_v37 = vand.u32 4294901760, %v511_v44  ;;  %v3954_v62 = vand.u32 4294901760, %v2859_v45  ;;  %v525_v28 = vsub.f32 %v2862_v59, %v3845_v57  ;;  %v3971_v57 = vld [vmem:[#allocation22_spill] sm:$0xff] }
  0x47   :  { %2006 = vmatprep.subr.mxu1 %v498_v5  ;;  %96 = vperm.xlu1 %2405, %v2526_v6   ;;  %v400_v49 = vand.u32 4294901760, %v399_v27  ;;  %v413_v34 = vsub.f32 %v2871_v47, %v3844_v41  ;;  %v2493_v44 = vmov 10   ;;  %v3970_v41 = vld [vmem:[#allocation21_spill] sm:$0xff] }
  0x48   :  { %v406_v40 = vsub.f32 %v2859_v45, %v3954_v62  ;;  %2007 = vmatpush3.msra.mxu1 %v386_v61  ;;  %v519_v5 = vand.u32 4294901760, %v518_v38  ;;  %v526_v55 = vand.u32 4294901760, %v525_v28  ;;  %1974 = vmatpush3.msra.mxu0 %v2821_v46  ;;  %v39_v61 = vlaneseq  ;;  %v172_v62 = vld [vmem:[#allocation5 + $0x160] sm:$0xff] }
  0x49   :  { %2008 = vmatprep.subr.mxu1 %v505_v58  ;;  %v414_v6 = vand.u32 4294901760, %v413_v34  ;;  %1975 = vmatprep.subr.mxu0 %v2824_v2 }
  0x4a   :  { %2009 = vmatpush3.msra.mxu1 %v393_v60  ;;  %v407_v52 = vand.u32 4294901760, %v406_v40  ;;  %1976 = vmatpush3.msra.mxu0 %v2831_v50  ;;  %v2912_v34 = vand.u32 127, %v39_v61  ;;  %v3846_v40 = vmov 0.0  }
  0x4b   :  { %2010 = vmatprep.subr.mxu1 %v512_v37  ;;  %2407 = vset.pattern.permute.xlu1 %v2493_v44 }
  0x4c   :  { %2011 = vmatpush3.msra.mxu1 %v400_v49  ;;  %101 = vperm.xlu1 %2407, %v2529_v7  }
  0x4d   :  { %2012 = vmatprep.subr.mxu1 %v519_v5  ;;  %1977 = vmatprep.subr.mxu0 %v2833_v33  ;;  %v3848_v5 = vmov 1.0  }
  0x4e   :  { %2013 = vmatpush3.msra.mxu1 %v407_v52  ;;  %1978 = vmatpush3.msra.mxu0 %v2842_v54 }
  0x4f   :  { %2014 = vmatprep.subr.mxu1 %v526_v55  ;;  %1979 = vmatprep.subr.mxu0 %v2844_v53 }
  0x50   :  { %2015 = vmatpush3.msra.mxu1 %v414_v6  ;;  %1980 = vmatpush3.msra.mxu0 %v2853_v43  ;;  %v3957_v6 = vmov 0 }
  0x51   :  { %2054 = vmatprep.subr.mxu1 %v2531_v8  ;;  %2019 = vmatprep.subr.mxu0 %v2540_v17 }
  0x97   :  { %v43_v7 = vpop.permute.xlu1 %42  ;;  %v67_v58 = vpop.permute.xlu0 %66 }
  0x98   :  { %vm68_vm0 = vcmp.eq.s32.totalorder %v2912_v34, %v67_v58  ;;  %vm44_vm9 = vcmp.eq.s32.totalorder %v2912_v34, %v43_v7 }
  0x9c   :  { %v48_v37 = vpop.permute.xlu1 %47  ;;  %v71_v38 = vpop.permute.xlu0 %70 }
  0x9d   :  { %vm72_vm1 = vcmp.eq.s32.totalorder %v2912_v34, %v71_v38  ;;  %vm49_vm6 = vcmp.eq.s32.totalorder %v2912_v34, %v48_v37 }
  0x9e   :  { %vm73_vm2 = vmor %vm68_vm0, %vm72_vm1 }
  0x9f   :  { %vm50_vm10 = vmor %vm44_vm9, %vm49_vm6 }
  0xa1   :  { %v76_v28 = vpop.permute.xlu1 %75  ;;  %v54_v60 = vpop.permute.xlu0 %53 }
  0xa2   :  { %vm77_vm3 = vcmp.eq.s32.totalorder %v2912_v34, %v76_v28  ;;  %vm55_vm8 = vcmp.eq.s32.totalorder %v2912_v34, %v54_v60 }
  0xa3   :  { %vm78_vm4 = vmor %vm73_vm2, %vm77_vm3 }
  0xa4   :  { %vm56_vm11 = vmor %vm50_vm10, %vm55_vm8 }
  0xa6   :  { %v81_v27 = vpop.permute.xlu1 %80 }
  0xa7   :  { %vm82_vm5 = vcmp.eq.s32.totalorder %v2912_v34, %v81_v27  ;;  %v3960_v27 = vld [vmem:[#allocation17_spill] sm:$0xff] }
  0xa8   :  { %vm2919_vm7 = vmor %vm78_vm4, %vm82_vm5 }
  0xa9   :  { %v1934_v49 = vsel %vm2919_vm7, 1.0, %v3846_v40  ;;  %1937 = vmatprep.mubr.msk.f32.mxu1 %vm2919_vm7, %v3848_v5 }
  0xaa   :  { %v289_v52 = vsub.f32 %v1934_v49, %v1934_v49  ;;  %v3961_v49 = vld [vmem:[#allocation11_spill] sm:$0xff] }
  0xab   :  { %v60_v55 = vpop.permute.xlu1 %59 }
  0xac   :  { %vm61_vm12 = vcmp.eq.s32.totalorder %v2912_v34, %v60_v55  ;;  %v290_v44 = vand.u32 4294901760, %v289_v52  ;;  %v3963_v55 = vld [vmem:[#allocation12_spill] sm:$0xff] }
  0xad   :  { %vm2932_vm13 = vmor %vm56_vm11, %vm61_vm12 }
  0xae   :  { %v3958_v6 = vsel %vm2932_vm13, 4294967295, %v3957_v6  ;;  %v1933_v58 = vsel %vm2932_vm13, 1.0, %v3846_v40  ;;  %1938 = vmatmul.mubr.msk.f32.vlgmr.msra.gmra.mxu1 %vm2932_vm13, %v3848_v5  ;;  %v291_v7 = vsub.f32 %v289_v52, %v290_v44  ;;  %v3972_v40 = vld [vmem:[#allocation23_spill] sm:$0xff]  ;;  %v3973_v5 = vld [vmem:[#allocation24_spill] sm:$0xff] }
  0xaf   :  { %3959 = vst [vmem:[#allocation36_spill] sm:$0xff] %v3958_v6  ;;  %v2942_v61 = vsub.f32 %v1933_v58, %v1933_v58  ;;  %2055 = vmatpush3.msra.mxu1 %v2533_v11  ;;  %773 = vmatprep.mubr.f32.mxu1 %v290_v44  ;;  %v3964_v44 = vld [vmem:[#allocation13_spill] sm:$0xff]  ;;  %v3965_v58 = vld [vmem:[#allocation14_spill] sm:$0xff] }
  0xb0   :  { %2056 = vmatprep.subr.mxu1 %v2535_v12  ;;  %v292_v37 = vand.u32 4294901760, %v291_v7  ;;  %v3966_v7 = vld [vmem:[#allocation15_spill] sm:$0xff]  ;;  %v3974_v6 = vld [vmem:[#allocation25_spill] sm:$0xff] }
  0xb1   :  { %2057 = vmatpush3.msra.mxu1 %v2537_v13  ;;  %v296_v38 = vand.u32 4294901760, %v2942_v61 }
  0xb2   :  { %2058 = vmatprep.subr.mxu1 %v2542_v18  ;;  %293 = vmatprep.mubr.f32.mxu0 %v292_v37  ;;  %v3967_v37 = vld [vmem:[#allocation16_spill] sm:$0xff] }
  0xb3   :  { %2059 = vmatpush3.msra.mxu1 %v2544_v19  ;;  %v297_v28 = vsub.f32 %v2942_v61, %v296_v38 }
  0xb4   :  { %2060 = vmatprep.subr.mxu1 %v2546_v20 }
  0xb5   :  { %2061 = vmatpush3.msra.mxu1 %v2558_v25  ;;  %v298_v60 = vand.u32 4294901760, %v297_v28  ;;  %v3968_v28 = vld [vmem:[#allocation19_spill] sm:$0xff] }
  0xb6   :  { %2062 = vmatprep.subr.mxu1 %v2619_v63 }
  0xb7   :  { %2063 = vmatpush3.msra.mxu1 %v2622_v3  ;;  %299 = vmatmul.mubr.f32.vlgmr.msra.gmra.mxu0 %v298_v60  ;;  %v3969_v60 = vld [vmem:[#allocation20_spill] sm:$0xff] }
  0xb8   :  { %2020 = vmatpush3.msra.mxu0 %v2550_v22  ;;  %2064 = vmatprep.subr.mxu1 %v2624_v4 }
  0xb9   :  { %2021 = vmatprep.subr.mxu0 %v2553_v23  ;;  %666 = vmatprep.mubr.f32.mxu0 %v289_v52  ;;  %v3962_v52 = vld [vmem:[#allocation18_spill] sm:$0xff] }
  0xba   :  { %2065 = vmatpush3.msra.mxu1 %v2626_v9  ;;  %2022 = vmatpush3.msra.mxu0 %v2556_v24 }
  0xbb   :  { %2066 = vmatprep.subr.mxu1 %v2632_v14  ;;  %2023 = vmatprep.subr.mxu0 %v2563_v29 }
  0xbc   :  { %2067 = vmatpush3.msra.mxu1 %v2634_v15  ;;  %2024 = vmatpush3.msra.mxu0 %v2566_v30 }
  0xbd   :  { %2068 = vmatprep.subr.mxu1 %v2636_v16  ;;  %2025 = vmatprep.subr.mxu0 %v2569_v31 }
  0xbe   :  { %2069 = vmatpush3.msra.mxu1 %v2648_v36  ;;  %2026 = vmatpush3.msra.mxu0 %v2577_v35 }
  0xbf   :  { %2070 = vmatprep.subr.mxu1 %v2722_v42  ;;  %2027 = vmatprep.subr.mxu0 %v2630_v10 }
  0xc0   :  { %2071 = vmatpush3.msra.mxu1 %v2727_v56  ;;  %2028 = vmatpush3.msra.mxu0 %v2640_v21 }
  0xc1   :  { %2072 = vmatprep.subr.mxu1 %v3960_v27  ;;  %2029 = vmatprep.subr.mxu0 %v3961_v49 }
  0xc2   :  { %2073 = vmatpush3.msra.mxu1 %v3962_v52  ;;  %2030 = vmatpush3.msra.mxu0 %v3963_v55 }
  0xc3   :  { %2074 = vmatprep.subr.mxu1 %v2737_v32  ;;  %2031 = vmatprep.subr.mxu0 %v3964_v44 }
  0xc4   :  { %2075 = vmatpush3.msra.mxu1 %v2740_v48  ;;  %2032 = vmatpush3.msra.mxu0 %v3965_v58 }
  0xc5   :  { %2076 = vmatprep.subr.mxu1 %v2742_v1  ;;  %2033 = vmatprep.subr.mxu0 %v3966_v7 }
  0xc6   :  { %2077 = vmatpush3.msra.mxu1 %v2754_v0  ;;  %2034 = vmatpush3.msra.mxu0 %v3967_v37 }
  0xc7   :  { %2078 = vmatprep.subr.mxu1 %v2815_v26  ;;  %2035 = vmatprep.subr.mxu0 %v3968_v28 }
  0xc8   :  { %2079 = vmatpush3.msra.mxu1 %v2821_v46  ;;  %2036 = vmatpush3.msra.mxu0 %v3969_v60 }
  0xc9   :  { %2080 = vmatprep.subr.mxu1 %v2824_v2  ;;  %2037 = vmatprep.subr.mxu0 %v3970_v41  ;;  %v3975_v2 = vld [vmem:[#allocation26_spill] sm:$0xff] }
  0xca   :  { %2081 = vmatpush3.msra.mxu1 %v2831_v50  ;;  %2038 = vmatpush3.msra.mxu0 %v3971_v57 }
  0xcb   :  { %2082 = vmatprep.subr.mxu1 %v2833_v33  ;;  %2039 = vmatprep.subr.mxu0 %v3972_v40  ;;  %v3976_v40 = vmov 1.0  }
  0xcc   :  { %2083 = vmatpush3.msra.mxu1 %v2842_v54  ;;  %2040 = vmatpush3.msra.mxu0 %v3973_v5  ;;  %v3977_v5 = vld [vmem:[#allocation28_spill] sm:$0xff] }
  0xcd   :  { %2084 = vmatprep.subr.mxu1 %v2844_v53  ;;  %2041 = vmatprep.subr.mxu0 %v3974_v6  ;;  %v3978_v6 = vld [vmem:[#allocation29_spill] sm:$0xff] }
  0xce   :  { %2085 = vmatpush3.msra.mxu1 %v2853_v43  ;;  %2042 = vmatpush3.msra.mxu0 %v3975_v2  ;;  %v191_v43 = vld [vmem:[#allocation5 + $0x1f8] sm:$0xff] }
  0xcf   :  { %777 = vmatmul.mubr.f32.vlgmr.msra.gmra.mxu1 %v296_v38  ;;  %2124 = vmatprep.subr.mxu1 %v2531_v8  ;;  %v175_v53 = vld [vmem:[#allocation5 + $0x178] sm:$0xff]  ;;  %v190_v8 = vld [vmem:[#allocation5 + $0x1f0] sm:$0xff]  ;;  %v3015_v38 = vand.u32 4294901760, %v191_v43 }
  0xd0   :  { %2043 = vmatprep.subr.mxu0 %v2828_v39  ;;  %2125 = vmatpush3.msra.mxu1 %v2533_v11  ;;  %v3979_v11 = vld [vmem:[#allocation31_spill] sm:$0xff] }
  0xd1   :  { %1941 = vmatprep.mubr.msk.f32.mxu1 %vm2919_vm7, %v3976_v40  ;;  %2044 = vmatpush3.msra.mxu0 %v3977_v5  ;;  %3980 = vst [vmem:[#allocation17_spill] sm:$0xff] %v3015_v38 }
  0xd2   :  { %2126 = vmatprep.subr.mxu1 %v2535_v12  ;;  %2045 = vmatprep.subr.mxu0 %v3978_v6  ;;  %v3017_v12 = vand.u32 4294901760, %v175_v53  ;;  %v174_v6 = vld [vmem:[#allocation5 + $0x170] sm:$0xff] }
  0xd3   :  { %2127 = vmatpush3.msra.mxu1 %v2537_v13  ;;  %2046 = vmatpush3.msra.mxu0 %v2848_v51  ;;  %v3021_v13 = vand.u32 4294901760, %v190_v8 }
  0xd4   :  { %2128 = vmatprep.subr.mxu1 %v2542_v18  ;;  %2047 = vmatprep.subr.mxu0 %v3979_v11  ;;  %3981 = vst [vmem:[#allocation11_spill] sm:$0xff] %v3017_v12  ;;  %v3027_v18 = vand.u32 4294901760, %v174_v6 }
  0xd5   :  { %2129 = vmatpush3.msra.mxu1 %v2544_v19  ;;  %2048 = vmatpush3.msra.mxu0 %v2859_v45  ;;  %v189_v19 = vld [vmem:[#allocation5 + $0x1e8] sm:$0xff]  ;;  %v3983_v45 = vand.u32 4294901760, %v2540_v17  ;;  %v3988_v17 = vand.u32 4294901760, %v2553_v23 }
  0xd6   :  { %2130 = vmatprep.subr.mxu1 %v2546_v20  ;;  %2049 = vmatprep.subr.mxu0 %v2862_v59  ;;  %3982 = vst [vmem:[#allocation18_spill] sm:$0xff] %v3027_v18  ;;  %v3033_v20 = vsub.f32 %v191_v43, %v3015_v38  ;;  %v3036_v59 = vsub.f32 %v175_v53, %v3017_v12  ;;  %v3989_v53 = vand.u32 4294901760, %v2556_v24  ;;  %v3992_v24 = vand.u32 4294901760, %v2566_v30 }
  0xd7   :  { %2131 = vmatpush3.msra.mxu1 %v2558_v25  ;;  %2050 = vmatpush3.msra.mxu0 %v2871_v47  ;;  %v173_v25 = vld [vmem:[#allocation5 + $0x168] sm:$0xff]  ;;  %v3986_v47 = vand.u32 4294901760, %v2550_v22  ;;  %v3055_v22 = vsub.f32 %v174_v6, %v3027_v18  ;;  %v3993_v6 = vand.u32 4294901760, %v2569_v31  ;;  %v3995_v30 = vand.u32 4294901760, %v2577_v35 }
  0xd8   :  { %2132 = vmatprep.subr.mxu1 %v2619_v63  ;;  %669 = vmatmul.mubr.f32.vlgmr.msra.gmra.mxu0 %v2942_v61  ;;  %3984 = vst [vmem:[#allocation12_spill] sm:$0xff] %v3033_v20  ;;  %3985 = vst [vmem:[#allocation13_spill] sm:$0xff] %v3036_v59  ;;  %v3044_v63 = vsub.f32 %v190_v8, %v3021_v13  ;;  %v3057_v43 = vand.u32 4294901760, %v173_v25  ;;  %v3860_v23 = vand.u32 4294901760, %v3033_v20  ;;  %v187_v8 = vld [vmem:[#allocation5 + $0x1d8] sm:$0xff] }
  0xd9   :  { %2089 = vmatprep.subr.mxu0 %v3983_v45  ;;  %2133 = vmatpush3.msra.mxu1 %v2622_v3  ;;  %v3049_v3 = vand.u32 4294901760, %v189_v19  ;;  %3990 = vst [vmem:[#allocation15_spill] sm:$0xff] %v3055_v22  ;;  %v188_v45 = vld [vmem:[#allocation5 + $0x1e0] sm:$0xff] }
  0xda   :  { %2090 = vmatpush3.msra.mxu0 %v3986_v47  ;;  %1939 = vmatprep.mubr.msk.f32.mxu0 %vm2919_vm7, %v3976_v40  ;;  %3987 = vst [vmem:[#allocation14_spill] sm:$0xff] %v3044_v63  ;;  %v3859_v47 = vand.u32 4294901760, %v3036_v59  ;;  %v3076_v61 = vand.u32 4294901760, %v188_v45  ;;  %v3085_v31 = vsub.f32 %v173_v25, %v3057_v43  ;;  %v170_v25 = vld [vmem:[#allocation5 + $0x150] sm:$0xff] }
  0xdb   :  { %2134 = vmatprep.subr.mxu1 %v2624_v4  ;;  %2091 = vmatprep.subr.mxu0 %v3988_v17  ;;  %v3991_v4 = vand.u32 4294901760, %v2563_v29  ;;  %v3074_v29 = vsub.f32 %v189_v19, %v3049_v3  ;;  %v3081_v17 = vpop.permute.xlu0 %108  ;;  %v3997_v19 = vand.u32 4294901760, %v2630_v10 }
  0xdc   :  { %2135 = vmatpush3.msra.mxu1 %v2626_v9  ;;  %2092 = vmatpush3.msra.mxu0 %v3989_v53  ;;  %v3858_v9 = vand.u32 4294901760, %v3044_v63  ;;  %3996 = vst [vmem:[#allocation19_spill] sm:$0xff] %v3085_v31  ;;  %v186_v53 = vld [vmem:[#allocation5 + $0x1d0] sm:$0xff]  ;;  %v3098_v35 = vsub.f32 %v3036_v59, %v3859_v47  ;;  %v169_v47 = vld [vmem:[#allocation5 + $0x148] sm:$0xff]  ;;  %vm110_vm15 = vcmp.eq.s32.totalorder %v2912_v34, %v3081_v17 }
  0xdd   :  { %2136 = vmatprep.subr.mxu1 %v2632_v14  ;;  %2093 = vmatprep.subr.mxu0 %v3991_v4  ;;  %v3071_v14 = vpop.permute.xlu1 %112  ;;  %3994 = vst [vmem:[#allocation16_spill] sm:$0xff] %v3074_v29  ;;  %v3100_v4 = vand.u32 4294901760, %v172_v62 }
  0xde   :  { %2137 = vmatpush3.msra.mxu1 %v2634_v15  ;;  %2094 = vmatpush3.msra.mxu0 %v3992_v24  ;;  %v171_v15 = vld [vmem:[#allocation5 + $0x158] sm:$0xff]  ;;  %v3108_v10 = vsub.f32 %v3044_v63, %v3858_v9  ;;  %v3110_v24 = vand.u32 4294901760, %v187_v8  ;;  %v4001_v9 = vand.u32 4294901760, %v3963_v55  ;;  %vm114_vm14 = vcmp.eq.s32.totalorder %v2912_v34, %v3071_v14  ;;  %v4023_v14 = vld [vmem:[#allocation23_spill] sm:$0xff] }
  0xdf   :  { %2138 = vmatprep.subr.mxu1 %v2636_v16  ;;  %2095 = vmatprep.subr.mxu0 %v3993_v6  ;;  %v3861_v16 = vand.u32 4294901760, %v3055_v22  ;;  %v3112_v6 = vand.u32 4294901760, %v171_v15  ;;  %vm3225_vm0 = vmor %vm110_vm15, %vm114_vm14 }
  0xe0   :  { %2139 = vmatpush3.msra.mxu1 %v2648_v36  ;;  %2096 = vmatpush3.msra.mxu0 %v3995_v30  ;;  %v3093_v36 = vsub.f32 %v3033_v20, %v3860_v23  ;;  %v3999_v30 = vand.u32 4294901760, %v3961_v49  ;;  %v3142_v23 = vsub.f32 %v172_v62, %v3100_v4  ;;  %v4004_v49 = vand.u32 4294901760, %v3965_v58  ;;  %v168_v62 = vld [vmem:[#allocation5 + $0x140] sm:$0xff] }
  0xe1   :  { %2140 = vmatprep.subr.mxu1 %v2722_v42  ;;  %2097 = vmatprep.subr.mxu0 %v3997_v19  ;;  %v3998_v42 = vand.u32 4294901760, %v2640_v21  ;;  %v3121_v21 = vand.u32 4294901760, %v186_v53  ;;  %v3148_v19 = vpop.permute.xlu0 %91  ;;  %v4008_v58 = vand.u32 4294901760, %v3074_v29 }
  0xe2   :  { %2141 = vmatpush3.msra.mxu1 %v2727_v56  ;;  %v3119_v56 = vsub.f32 %v188_v45, %v3076_v61  ;;  %v4002_v45 = vand.u32 4294901760, %v3964_v44  ;;  %4003 = vst [vmem:[#allocation21_spill] sm:$0xff] %v3142_v23  ;;  %v3151_v44 = vsub.f32 %v187_v8, %v3110_v24  ;;  %vm93_vm6 = vcmp.eq.s32.totalorder %v2912_v34, %v3148_v19 }
  0xe3   :  { %2098 = vmatpush3.msra.mxu0 %v3998_v42  ;;  %2142 = vmatprep.subr.mxu1 %v3960_v27  ;;  %v185_v42 = vld [vmem:[#allocation5 + $0x1c8] sm:$0xff]  ;;  %v3129_v27 = vsub.f32 %v3055_v22, %v3861_v16  ;;  %v184_v16 = vld [vmem:[#allocation5 + $0x1c0] sm:$0xff]  ;;  %v3168_v8 = vsub.f32 %v186_v53, %v3121_v21 }
  0xe4   :  { %2099 = vmatprep.subr.mxu0 %v3999_v30  ;;  %4000 = vst [vmem:[#allocation20_spill] sm:$0xff] %v3119_v56  ;;  %2143 = vmatpush3.msra.mxu1 %v3962_v52  ;;  %v3132_v30 = vand.u32 4294901760, %v170_v25  ;;  %4005 = vst [vmem:[#allocation22_spill] sm:$0xff] %v3151_v44  ;;  %v3156_v55 = vand.u32 4294901760, %v185_v42  ;;  %v183_v52 = vld [vmem:[#allocation5 + $0x1b8] sm:$0xff]  ;;  %v3184_v53 = vand.u32 4294901760, %v184_v16 }
  0xe5   :  { %2100 = vmatpush3.msra.mxu0 %v4001_v9  ;;  %2144 = vmatprep.subr.mxu1 %v2737_v32  ;;  %v3139_v9 = vpop.permute.xlu1 %87  ;;  %4009 = vst [vmem:[#allocation28_spill] sm:$0xff] %v3168_v8  ;;  %v4025_v22 = vand.u32 4294901760, %v3119_v56 }
  0xe6   :  { %2101 = vmatprep.subr.mxu0 %v4002_v45  ;;  %2145 = vmatpush3.msra.mxu1 %v2740_v48  ;;  %v3154_v45 = vsub.f32 %v171_v15, %v3112_v6  ;;  %v4007_v48 = vand.u32 4294901760, %v3966_v7  ;;  %v3170_v15 = vand.u32 4294901760, %v169_v47  ;;  %v3182_v32 = vsub.f32 %v170_v25, %v3132_v30  ;;  %v182_v25 = vld [vmem:[#allocation5 + $0x1b0] sm:$0xff] }
  0xe7   :  { %2102 = vmatpush3.msra.mxu0 %v4004_v49  ;;  %2146 = vmatprep.subr.mxu1 %v2742_v1  ;;  %v3164_v49 = vsub.f32 %v3074_v29, %v4008_v58  ;;  %v4010_v1 = vand.u32 4294901760, %v3967_v37  ;;  %v167_v29 = vld [vmem:[#allocation5 + $0x138] sm:$0xff]  ;;  %v3204_v7 = vand.u32 4294901760, %v183_v52  ;;  %v4017_v37 = vand.u32 4294901760, %v3970_v41 }
  0xe8   :  { %4006 = vst [vmem:[#allocation26_spill] sm:$0xff] %v3154_v45  ;;  %2103 = vmatprep.subr.mxu0 %v4007_v48  ;;  %2147 = vmatpush3.msra.mxu1 %v2754_v0  ;;  %v4011_v48 = vand.u32 4294901760, %v3085_v31  ;;  %4012 = vst [vmem:[#allocation31_spill] sm:$0xff] %v3182_v32  ;;  %v4013_v0 = vand.u32 4294901760, %v3968_v28  ;;  %v4041_v41 = vand.u32 4294901760, %v3168_v8  ;;  %vm89_vm5 = vcmp.eq.s32.totalorder %v2912_v34, %v3139_v9 }
  0xe9   :  { %2104 = vmatpush3.msra.mxu0 %v4010_v1  ;;  %2148 = vmatprep.subr.mxu1 %v2815_v26  ;;  %v3194_v1 = vand.u32 4294901760, %v168_v62  ;;  %v3214_v26 = vand.u32 4294901760, %v167_v29  ;;  %vm3506_vm7 = vmor %vm89_vm5, %vm93_vm6 }
  0xea   :  { %v3179_v58 = vsub.f32 %v3085_v31, %v4011_v48  ;;  %2105 = vmatprep.subr.mxu0 %v4013_v0  ;;  %2149 = vmatpush3.msra.mxu1 %v2821_v46  ;;  %v4014_v48 = vand.u32 4294901760, %v3969_v60  ;;  %v3202_v0 = vsub.f32 %v185_v42, %v3156_v55  ;;  %v4016_v31 = vld [vmem:[#allocation27_spill] sm:$0xff]  ;;  %v118_v46 = vpop.permute.xlu1 %117  ;;  %v4019_v42 = vand.u32 4294901760, %v3971_v57 }
  0xeb   :  { %2150 = vmatprep.subr.mxu1 %v4016_v31  ;;  %vm119_vm1 = vcmp.eq.s32.totalorder %v2912_v34, %v118_v46  ;;  %v3234_v57 = vand.u32 4294901760, %v182_v25  ;;  %v3243_v60 = vsub.f32 %v3119_v56, %v4025_v22  ;;  %v4026_v31 = vand.u32 4294901760, %v3142_v23 }
  0xec   :  { %2106 = vmatpush3.msra.mxu0 %v4014_v48  ;;  %4015 = vst [vmem:[#allocation37_spill] sm:$0xff] %v3202_v0  ;;  %v3212_v48 = vsub.f32 %v169_v47, %v3170_v15  ;;  %2151 = vmatpush3.msra.mxu1 %v2831_v50  ;;  %v123_v47 = vpop.permute.xlu0 %122  ;;  %v3232_v50 = vsub.f32 %v184_v16, %v3184_v53  ;;  %v1185_v17 = vand.u32 4294901760, %v3179_v58  ;;  %v4030_v58 = vand.u32 4294901760, %v3151_v44  ;;  %vm3277_vm2 = vmor %vm3225_vm0, %vm119_vm1 }
  0xed   :  { %2107 = vmatprep.subr.mxu0 %v4017_v37  ;;  %v166_v37 = vld [vmem:[#allocation5 + $0x130] sm:$0xff]  ;;  %2152 = vmatprep.subr.mxu1 %v2833_v33  ;;  %v3248_v16 = vsub.f32 %v3142_v23, %v4026_v31  ;;  %v3251_v28 = vsub.f32 %v168_v62, %v3194_v1  ;;  %v4031_v22 = vand.u32 4294901760, %v3154_v45  ;;  %v3268_v62 = vsub.f32 %v183_v52, %v3204_v7  ;;  %v181_v23 = vld [vmem:[#allocation5 + $0x1a8] sm:$0xff] }
  0xee   :  { %4018 = vst [vmem:[#allocation27_spill] sm:$0xff] %v3212_v48  ;;  %2108 = vmatpush3.msra.mxu0 %v4019_v42  ;;  %4022 = vst [vmem:[#allocation38_spill] sm:$0xff] %v3232_v50  ;;  %v4024_v42 = vand.u32 4294901760, %v4023_v14  ;;  %2153 = vmatpush3.msra.mxu1 %v2842_v54  ;;  %v4028_v33 = vld [vmem:[#allocation24_spill] sm:$0xff]  ;;  %v4033_v54 = vld [vmem:[#allocation30_spill] sm:$0xff]  ;;  %vm124_vm3 = vcmp.eq.s32.totalorder %v2912_v34, %v123_v47  ;;  %v3284_v52 = vsub.f32 %v167_v29, %v3214_v26 }
  0xef   :  { %4027 = vst [vmem:[#allocation23_spill] sm:$0xff] %v3251_v28  ;;  %v4029_v14 = vand.u32 4294901760, %v4028_v33  ;;  %v3264_v56 = vsub.f32 %v3154_v45, %v4031_v22  ;;  %4032 = vst [vmem:[#allocation24_spill] sm:$0xff] %v3268_v62  ;;  %2154 = vmatprep.subr.mxu1 %v4033_v54  ;;  %v4034_v33 = vld [vmem:[#allocation25_spill] sm:$0xff]  ;;  %v3286_v31 = vand.u32 4294901760, %v166_v37  ;;  %v165_v54 = vld [vmem:[#allocation5 + $0x128] sm:$0xff] }
  0xf0   :  { %2109 = vmatprep.subr.mxu0 %v4024_v42  ;;  %v3259_v42 = vsub.f32 %v3151_v44, %v4030_v58  ;;  %4038 = vst [vmem:[#allocation30_spill] sm:$0xff] %v3284_v52  ;;  %v4040_v46 = vand.u32 4294901760, %v3975_v2  ;;  %v4042_v45 = vand.u32 4294901760, %v3182_v32  ;;  %v3303_v44 = vsub.f32 %v182_v25, %v3234_v57  ;;  %vm3324_vm4 = vmor %vm3277_vm2, %vm124_vm3 }
  0xf1   :  { %2110 = vmatpush3.msra.mxu0 %v4029_v14  ;;  %v4035_v14 = vand.u32 4294901760, %v4034_v33  ;;  %v4039_v33 = vld [vmem:[#allocation32_spill] sm:$0xff]  ;;  %v4045_v2 = vand.u32 4294901760, %v3093_v36  ;;  %v4046_v29 = vand.u32 4294901760, %v2828_v39  ;;  %v4047_v25 = vand.u32 4294901760, %v3098_v35  ;;  %v180_v35 = vld [vmem:[#allocation5 + $0x1a0] sm:$0xff] }
  0xf2   :  { %2155 = vmatpush3.msra.mxu1 %v4039_v33  ;;  %v3299_v22 = vsub.f32 %v3182_v32, %v4042_v45  ;;  %4043 = vst [vmem:[#allocation25_spill] sm:$0xff] %v3303_v44  ;;  %v3313_v45 = vand.u32 4294901760, %v181_v23  ;;  %v1311_v32 = vand.u32 4294901760, %v3259_v42  ;;  %v4052_v42 = vand.u32 4294901760, %v3977_v5 }
  0xf3   :  { %2111 = vmatprep.subr.mxu0 %v4035_v14  ;;  %v3294_v14 = vsub.f32 %v3168_v8, %v4041_v41  ;;  %1942 = vmatmul.mubr.msk.f32.vlgmr.msra.gmra.mxu1 %vm2932_vm13, %v3976_v40  ;;  %v1192_v41 = vand.u32 4294901760, %v3248_v16  ;;  %v4053_v47 = vand.u32 4294901760, %v3108_v10  ;;  %v1199_v58 = vand.u32 4294901760, %v3264_v56  ;;  %v164_v8 = vld [vmem:[#allocation5 + $0x120] sm:$0xff] }
  0xf4   :  { %2112 = vmatpush3.msra.mxu0 %v4040_v46  ;;  %2194 = vmatprep.subr.mxu1 %v4045_v2  ;;  %v1304_v46 = vand.u32 4294901760, %v3243_v60  ;;  %v4050_v60 = vand.u32 4294901760, %v3202_v0  ;;  %v4054_v2 = vand.u32 4294901760, %v3212_v48  ;;  %v3348_v39 = vsub.f32 %v166_v37, %v3286_v31  ;;  %v179_v37 = vld [vmem:[#allocation5 + $0x198] sm:$0xff] }
  0xf5   :  { %2113 = vmatprep.subr.mxu0 %v4046_v29  ;;  %2195 = vmatpush3.msra.mxu1 %v4047_v25  ;;  %v3334_v29 = vand.u32 4294901760, %v165_v54  ;;  %v4058_v5 = vand.u32 4294901760, %v3129_v27  ;;  %v1318_v10 = vand.u32 4294901760, %v3294_v14  ;;  %v1206_v56 = vand.u32 4294901760, %v3299_v22 }
  0xf6   :  { %v3331_v16 = vsub.f32 %v3202_v0, %v4050_v60  ;;  %2114 = vmatpush3.msra.mxu0 %v4052_v42  ;;  %2196 = vmatprep.subr.mxu1 %v4053_v47  ;;  %v3344_v25 = vsub.f32 %v3212_v48, %v4054_v2  ;;  %4055 = vst [vmem:[#allocation36_spill] sm:$0xff] %v3348_v39  ;;  %v4056_v0 = vld [vmem:[#allocation29_spill] sm:$0xff]  ;;  %v4059_v42 = vand.u32 4294901760, %v3232_v50  ;;  %v4060_v60 = vand.u32 4294901760, %v2848_v51 }
  0xf7   :  { %4051 = vst [vmem:[#allocation32_spill] sm:$0xff] %v3334_v29  ;;  %v4057_v63 = vand.u32 4294901760, %v4056_v0  ;;  %2197 = vmatpush3.msra.mxu1 %v4058_v5  ;;  %v4062_v27 = vmov 0.0   ;;  %v4063_v22 = vand.u32 4294901760, %v3251_v28  ;;  %v3375_v5 = vsub.f32 %v181_v23, %v3313_v45  ;;  %v163_v2 = vld [vmem:[#allocation5 + $0x118] sm:$0xff]  ;;  %v178_v23 = vld [vmem:[#allocation5 + $0x190] sm:$0xff]  ;;  %1943 = vmatprep.mubr.msk.f32.mxu1 %vm3324_vm4, %v3976_v40 }
  0xf8   :  { %v3359_v47 = vsub.f32 %v3232_v50, %v4059_v42  ;;  %v1936_v0 = vsel %vm3324_vm4, 1.0, %v4062_v27  ;;  %v3377_v42 = vand.u32 4294901760, %v180_v35  ;;  %v4065_v51 = vand.u32 4294901760, %v3979_v11  ;;  %v4068_v50 = vld [vmem:[#allocation33_spill] sm:$0xff] }
  0xf9   :  { %2115 = vmatprep.subr.mxu0 %v4057_v63  ;;  %v4061_v63 = vand.u32 4294901760, %v3164_v49  ;;  %v3372_v14 = vsub.f32 %v3251_v28, %v4063_v22  ;;  %v1325_v49 = vand.u32 4294901760, %v3331_v16  ;;  %v3388_v22 = vsub.f32 %v165_v54, %v3334_v29  ;;  %v162_v54 = vld [vmem:[#allocation5 + $0x110] sm:$0xff] }
  0xfa   :  { %2116 = vmatpush3.msra.mxu0 %v4060_v60  ;;  %4064 = vst [vmem:[#allocation29_spill] sm:$0xff] %v3377_v42  ;;  %v4066_v60 = vand.u32 4294901760, %v3268_v62  ;;  %v3390_v28 = vand.u32 4294901760, %v164_v8  ;;  %v4069_v48 = vand.u32 4294901760, %v4068_v50  ;;  %v1213_v11 = vand.u32 4294901760, %v3344_v25 }
  0xfb   :  { %2198 = vmatprep.subr.mxu1 %v4061_v63  ;;  %2117 = vmatprep.subr.mxu0 %v4065_v51  ;;  %4067 = vst [vmem:[#allocation39_spill] sm:$0xff] %v3388_v22  ;;  %v3405_v20 = vsub.f32 %v1936_v0, %v1936_v0  ;;  %v4074_v50 = vand.u32 4294901760, %v3303_v44  ;;  %v3413_v25 = vand.u32 4294901760, %v163_v2  ;;  %v4075_v51 = vld [vmem:[#allocation35_spill] sm:$0xff]  ;;  %v4078_v33 = vand.u32 4294901760, %v3348_v39 }
  0xfc   :  { %2199 = vmatpush3.msra.mxu1 %v1185_v17  ;;  %v3385_v63 = vsub.f32 %v3268_v62, %v4066_v60  ;;  %2118 = vmatpush3.msra.mxu0 %v4069_v48  ;;  %v4070_v17 = vand.u32 4294901760, %v3284_v52  ;;  %v3401_v60 = vand.u32 4294901760, %v179_v37  ;;  %v4072_v62 = vld [vmem:[#allocation34_spill] sm:$0xff]  ;;  %v1332_v48 = vand.u32 4294901760, %v3359_v47  ;;  %v161_v0 = vld [vmem:[#allocation5 + $0x108] sm:$0xff] }
  0xfd   :  { %2200 = vmatprep.subr.mxu1 %v1304_v46  ;;  %v4073_v59 = vand.u32 4294901760, %v4072_v62  ;;  %v3411_v46 = vsub.f32 %v3303_v44, %v4074_v50  ;;  %v1220_v62 = vand.u32 4294901760, %v3372_v14  ;;  %v3422_v47 = vand.u32 4294901760, %v178_v23 }
  0xfe   :  { %v3398_v16 = vsub.f32 %v3284_v52, %v4070_v17  ;;  %4071 = vst [vmem:[#allocation33_spill] sm:$0xff] %v3401_v60  ;;  %2201 = vmatpush3.msra.mxu1 %v1192_v41  ;;  %v177_v17 = vld [vmem:[#allocation5 + $0x188] sm:$0xff]  ;;  %v4076_v52 = vand.u32 4294901760, %v4075_v51  ;;  %v3420_v41 = vsub.f32 %v180_v35, %v3377_v42  ;;  %v1339_v51 = vand.u32 4294901760, %v3385_v63  ;;  %v176_v35 = vld [vmem:[#allocation5 + $0x180] sm:$0xff] }
  0xff   :  { %2119 = vmatprep.subr.mxu0 %v4073_v59  ;;  %2202 = vmatprep.subr.mxu1 %v1311_v32  ;;  %v3433_v14 = vand.u32 4294901760, %v162_v54  ;;  %v1233_v59 = vsub.f32 %v3348_v39, %v4078_v33  ;;  %v3441_v44 = vsub.f32 %v179_v37, %v3401_v60  ;;  %v3443_v63 = vand.u32 4294901760, %v177_v17  ;;  %v160_v32 = vld [vmem:[#allocation5 + $0x100] sm:$0xff] }
 0x100   :  { %2120 = vmatpush3.msra.mxu0 %v4076_v52  ;;  %v3431_v52 = vsub.f32 %v164_v8, %v3390_v28  ;;  %2203 = vmatpush3.msra.mxu1 %v1199_v58  ;;  %v1227_v50 = vand.u32 4294901760, %v3398_v16  ;;  %v97_v8 = vpop.permute.xlu1 %96  ;;  %v1346_v58 = vand.u32 4294901760, %v3411_v46  ;;  %v3449_v16 = vsub.f32 %v163_v2, %v3413_v25 }
 0x101   :  { %1940 = vmatmul.mubr.msk.f32.vlgmr.msra.gmra.mxu0 %vm2932_vm13, %v3976_v40  ;;  %2159 = vmatprep.subr.mxu0 %v3015_v38  ;;  %4077 = vst [vmem:[#allocation34_spill] sm:$0xff] %v3433_v14  ;;  %v3451_v38 = vand.u32 4294901760, %v161_v0  ;;  %v4079_v37 = vand.u32 4294901760, %v3375_v5  ;;  %v3459_v39 = vsub.f32 %v178_v23, %v3422_v47  ;;  %v3461_v46 = vand.u32 4294901760, %v176_v35  ;;  %v4137_v36 = vld [vmem:[#allocation29_spill] sm:$0xff] }
 0x102   :  { %2160 = vmatpush3.msra.mxu0 %v3017_v12  ;;  %2204 = vmatprep.subr.mxu1 %v1318_v10  ;;  %v4080_v2 = vand.u32 4294901760, %v3388_v22  ;;  %v3480_v23 = vsub.f32 %v177_v17, %v3443_v63  ;;  %vm98_vm8 = vcmp.eq.s32.totalorder %v2912_v34, %v97_v8 }
 0x103   :  { %2161 = vmatprep.subr.mxu0 %v3021_v13  ;;  %2205 = vmatpush3.msra.mxu1 %v1206_v56  ;;  %v1352_v33 = vsub.f32 %v3375_v5, %v4079_v37  ;;  %v3471_v37 = vand.u32 4294901760, %v160_v32  ;;  %vm3533_vm9 = vmor %vm3506_vm7, %vm98_vm8 }
 0x104   :  { %2162 = vmatpush3.msra.mxu0 %v3027_v18  ;;  %2206 = vmatprep.subr.mxu1 %v1325_v49  ;;  %v1240_v56 = vsub.f32 %v3388_v22, %v4080_v2  ;;  %v3469_v18 = vsub.f32 %v162_v54, %v3433_v14  ;;  %v1234_v54 = vand.u32 4294901760, %v1233_v59  ;;  %v4081_v2 = vand.u32 4294901760, %v3405_v20 }
 0x105   :  { %2163 = vmatprep.subr.mxu0 %v3049_v3  ;;  %2207 = vmatpush3.msra.mxu1 %v1213_v11  ;;  %v3488_v22 = vsub.f32 %v161_v0, %v3451_v38  ;;  %v1353_v11 = vand.u32 4294901760, %v1352_v33  ;;  %v3498_v49 = vsub.f32 %v176_v35, %v3461_v46  ;;  %v102_v0 = vpop.permute.xlu1 %101  ;;  %v4085_v33 = vand.u32 4294901760, %v3431_v52 }
 0x106   :  { %2164 = vmatpush3.msra.mxu0 %v3057_v43  ;;  %2208 = vmatprep.subr.mxu1 %v1332_v48  ;;  %v1153_v12 = vsub.f32 %v3405_v20, %v4081_v2  ;;  %v4082_v48 = vand.u32 4294901760, %v3420_v41  ;;  %v3517_v19 = vsub.f32 %v160_v32, %v3471_v37  ;;  %v1241_v9 = vand.u32 4294901760, %v1240_v56 }
 0x107   :  { %2165 = vmatprep.subr.mxu0 %v3076_v61  ;;  %2209 = vmatpush3.msra.mxu1 %v1220_v62  ;;  %v1247_v35 = vsub.f32 %v3431_v52, %v4085_v33  ;;  %v3912_v10 = vand.u32 4294901760, %v3480_v23  ;;  %v4087_v33 = vand.u32 4294901760, %v3449_v16  ;;  %vm103_vm10 = vcmp.eq.s32.totalorder %v2912_v34, %v102_v0 }
 0x108   :  { %v1359_v17 = vsub.f32 %v3420_v41, %v4082_v48  ;;  %2166 = vmatpush3.msra.mxu0 %v3100_v4  ;;  %2210 = vmatprep.subr.mxu1 %v1339_v51  ;;  %v4086_v48 = vand.u32 4294901760, %v3441_v44  ;;  %v1154_v51 = vand.u32 4294901760, %v1153_v12  ;;  %v4091_v62 = vand.u32 4294901760, %v3469_v18  ;;  %vm3556_vm11 = vmor %vm3533_vm9, %vm103_vm10 }
 0x109   :  { %2167 = vmatprep.subr.mxu0 %v3110_v24  ;;  %2211 = vmatpush3.msra.mxu1 %v1227_v50  ;;  %v1254_v2 = vsub.f32 %v3449_v16, %v4087_v33  ;;  %v1248_v8 = vand.u32 4294901760, %v1247_v35  ;;  %v3910_v32 = vand.u32 4294901760, %v3517_v19 }
 0x10a   :  { %v1366_v59 = vsub.f32 %v3441_v44, %v4086_v48  ;;  %2168 = vmatpush3.msra.mxu0 %v3112_v6  ;;  %2212 = vmatprep.subr.mxu1 %v1346_v58  ;;  %v1360_v12 = vand.u32 4294901760, %v1359_v17  ;;  %v4090_v58 = vand.u32 4294901760, %v3459_v39  ;;  %v3911_v48 = vand.u32 4294901760, %v3498_v49 }
 0x10b   :  { %2169 = vmatprep.subr.mxu0 %v3121_v21  ;;  %2213 = vmatpush3.msra.mxu1 %v1234_v54  ;;  %v1261_v33 = vsub.f32 %v3469_v18, %v4091_v62  ;;  %v1380_v17 = vsub.f32 %v3480_v23, %v3912_v10  ;;  %v1255_v35 = vand.u32 4294901760, %v1254_v2  ;;  %v1275_v2 = vsub.f32 %v3517_v19, %v3910_v32  ;;  %v4113_v32 = vld [vmem:[#allocation27_spill] sm:$0xff] }
 0x10c   :  { %v1373_v56 = vsub.f32 %v3459_v39, %v4090_v58  ;;  %2170 = vmatpush3.msra.mxu0 %v3132_v30  ;;  %2214 = vmatprep.subr.mxu1 %v1353_v11  ;;  %v1367_v54 = vand.u32 4294901760, %v1366_v59  ;;  %v4092_v11 = vmov 0  ;;  %v4095_v58 = vand.u32 4294901760, %v3488_v22  ;;  %v4115_v10 = vld [vmem:[#allocation23_spill] sm:$0xff] }
 0x10d   :  { %2171 = vmatprep.subr.mxu0 %v3156_v55  ;;  %2215 = vmatpush3.msra.mxu1 %v1241_v9  ;;  %v4093_v11 = vsel %vm3556_vm11, 4294967295, %v4092_v11  ;;  %v1387_v34 = vsub.f32 %v3498_v49, %v3911_v48  ;;  %v1262_v0 = vand.u32 4294901760, %v1261_v33  ;;  %v1381_v50 = vand.u32 4294901760, %v1380_v17  ;;  %v4096_v33 = vld [vmem:[#allocation17_spill] sm:$0xff]  ;;  %v4114_v48 = vld [vmem:[#allocation38_spill] sm:$0xff] }
 0x10e   :  { %4094 = vst [vmem:[#allocation35_spill] sm:$0xff] %v4093_v11  ;;  %2172 = vmatpush3.msra.mxu0 %v3170_v15  ;;  %1155 = vmatprep.mubr.f32.mxu0 %v1154_v51  ;;  %v1268_v59 = vsub.f32 %v3488_v22, %v4095_v58  ;;  %v1374_v9 = vand.u32 4294901760, %v1373_v56  ;;  %v1935_v51 = vsel %vm3556_vm11, 1.0, %v4062_v27  ;;  %v1276_v62 = vand.u32 4294901760, %v1275_v2  ;;  %v4099_v58 = vld [vmem:[#allocation18_spill] sm:$0xff]  ;;  %v4103_v2 = vld [vmem:[#allocation15_spill] sm:$0xff] }
 0x10f   :  { %2216 = vmatprep.subr.mxu1 %v1360_v12  ;;  %2173 = vmatprep.subr.mxu0 %v3184_v53  ;;  %v1388_v56 = vand.u32 4294901760, %v1387_v34  ;;  %v4098_v17 = vand.u32 4294901760, %v3405_v20  ;;  %v4101_v34 = vld [vmem:[#allocation13_spill] sm:$0xff]  ;;  %v4117_v11 = vld [vmem:[#allocation30_spill] sm:$0xff] }
 0x110   :  { %2217 = vmatpush3.msra.mxu1 %v1248_v8  ;;  %2174 = vmatpush3.msra.mxu0 %v3194_v1  ;;  %v1269_v12 = vand.u32 4294901760, %v1268_v59  ;;  %v3578_v8 = vsub.f32 %v1935_v51, %v1935_v51  ;;  %v4104_v51 = vld [vmem:[#allocation16_spill] sm:$0xff] }
 0x111   :  { %2218 = vmatprep.subr.mxu1 %v1367_v54  ;;  %2175 = vmatprep.subr.mxu0 %v3204_v7  ;;  %v4097_v54 = vld [vmem:[#allocation11_spill] sm:$0xff] }
 0x112   :  { %2219 = vmatpush3.msra.mxu1 %v1255_v35  ;;  %2176 = vmatpush3.msra.mxu0 %v3214_v26  ;;  %v3913_v27 = vand.u32 4294901760, %v3578_v8 }
 0x113   :  { %2220 = vmatprep.subr.mxu1 %v1374_v9  ;;  %2177 = vmatprep.subr.mxu0 %v3234_v57  ;;  %v4100_v9 = vld [vmem:[#allocation12_spill] sm:$0xff] }
 0x114   :  { %2221 = vmatpush3.msra.mxu1 %v1262_v0  ;;  %2178 = vmatpush3.msra.mxu0 %v3286_v31  ;;  %v1159_v35 = vsub.f32 %v3578_v8, %v3913_v27  ;;  %v4102_v0 = vld [vmem:[#allocation14_spill] sm:$0xff]  ;;  %v4116_v27 = vld [vmem:[#allocation24_spill] sm:$0xff] }
 0x115   :  { %2222 = vmatprep.subr.mxu1 %v1381_v50  ;;  %2179 = vmatprep.subr.mxu0 %v3313_v45  ;;  %v4105_v50 = vld [vmem:[#allocation19_spill] sm:$0xff] }
 0x116   :  { %2223 = vmatpush3.msra.mxu1 %v1269_v12  ;;  %2180 = vmatpush3.msra.mxu0 %v3334_v29  ;;  %v1160_v59 = vand.u32 4294901760, %v1159_v35  ;;  %v4106_v12 = vld [vmem:[#allocation20_spill] sm:$0xff]  ;;  %v4111_v35 = vld [vmem:[#allocation31_spill] sm:$0xff] }
 0x117   :  { %2224 = vmatprep.subr.mxu1 %v1388_v56  ;;  %2181 = vmatprep.subr.mxu0 %v3377_v42  ;;  %v4108_v56 = vld [vmem:[#allocation22_spill] sm:$0xff] }
 0x118   :  { %2225 = vmatpush3.msra.mxu1 %v1276_v62  ;;  %2182 = vmatpush3.msra.mxu0 %v3390_v28  ;;  %v4109_v62 = vld [vmem:[#allocation26_spill] sm:$0xff] }
 0x119   :  { %1944 = vmatmul.mubr.msk.f32.vlgmr.msra.gmra.mxu1 %vm3556_vm11, %v3976_v40  ;;  %2264 = vmatprep.subr.mxu1 %v4096_v33 }
 0x11a   :  { %2183 = vmatprep.subr.mxu0 %v3401_v60  ;;  %2265 = vmatpush3.msra.mxu1 %v4097_v54 }
 0x11b   :  { %1635 = vmatprep.mubr.f32.mxu1 %v4098_v17  ;;  %2184 = vmatpush3.msra.mxu0 %v3413_v25  ;;  %v4110_v17 = vld [vmem:[#allocation28_spill] sm:$0xff] }
 0x11c   :  { %2266 = vmatprep.subr.mxu1 %v3021_v13  ;;  %2185 = vmatprep.subr.mxu0 %v3422_v47 }
 0x11d   :  { %2267 = vmatpush3.msra.mxu1 %v4099_v58  ;;  %2186 = vmatpush3.msra.mxu0 %v3433_v14 }
 0x11e   :  { %2268 = vmatprep.subr.mxu1 %v3049_v3  ;;  %2187 = vmatprep.subr.mxu0 %v3443_v63 }
 0x11f   :  { %2269 = vmatpush3.msra.mxu1 %v3057_v43  ;;  %2188 = vmatpush3.msra.mxu0 %v3451_v38 }
 0x120   :  { %2270 = vmatprep.subr.mxu1 %v3076_v61  ;;  %2189 = vmatprep.subr.mxu0 %v3461_v46 }
 0x121   :  { %2271 = vmatpush3.msra.mxu1 %v3100_v4  ;;  %2190 = vmatpush3.msra.mxu0 %v3471_v37 }
 0x122   :  { %2272 = vmatprep.subr.mxu1 %v3110_v24  ;;  %1161 = vmatmul.mubr.f32.vlgmr.msra.gmra.mxu0 %v1160_v59  ;;  %v4112_v59 = vld [vmem:[#allocation37_spill] sm:$0xff] }
 0x123   :  { %2229 = vmatprep.subr.mxu0 %v4100_v9  ;;  %2273 = vmatpush3.msra.mxu1 %v3112_v6 }
 0x124   :  { %2230 = vmatpush3.msra.mxu0 %v4101_v34  ;;  %1528 = vmatprep.mubr.f32.mxu0 %v3405_v20  ;;  %v4107_v20 = vld [vmem:[#allocation21_spill] sm:$0xff] }
 0x125   :  { %2274 = vmatprep.subr.mxu1 %v3121_v21  ;;  %2231 = vmatprep.subr.mxu0 %v4102_v0 }
 0x126   :  { %2275 = vmatpush3.msra.mxu1 %v3132_v30  ;;  %2232 = vmatpush3.msra.mxu0 %v4103_v2 }
 0x127   :  { %2276 = vmatprep.subr.mxu1 %v3156_v55  ;;  %2233 = vmatprep.subr.mxu0 %v4104_v51 }
 0x128   :  { %2277 = vmatpush3.msra.mxu1 %v3170_v15  ;;  %2234 = vmatpush3.msra.mxu0 %v4105_v50 }
 0x129   :  { %2278 = vmatprep.subr.mxu1 %v3184_v53  ;;  %2235 = vmatprep.subr.mxu0 %v4106_v12 }
 0x12a   :  { %2279 = vmatpush3.msra.mxu1 %v3194_v1  ;;  %2236 = vmatpush3.msra.mxu0 %v4107_v20 }
 0x12b   :  { %2280 = vmatprep.subr.mxu1 %v3204_v7  ;;  %2237 = vmatprep.subr.mxu0 %v4108_v56 }
 0x12c   :  { %2281 = vmatpush3.msra.mxu1 %v3214_v26  ;;  %2238 = vmatpush3.msra.mxu0 %v4109_v62 }
 0x12d   :  { %2282 = vmatprep.subr.mxu1 %v3234_v57  ;;  %2239 = vmatprep.subr.mxu0 %v4110_v17 }
 0x12e   :  { %2283 = vmatpush3.msra.mxu1 %v3286_v31  ;;  %2240 = vmatpush3.msra.mxu0 %v4111_v35 }
 0x12f   :  { %2284 = vmatprep.subr.mxu1 %v3313_v45  ;;  %2241 = vmatprep.subr.mxu0 %v4112_v59 }
 0x130   :  { %2285 = vmatpush3.msra.mxu1 %v3334_v29  ;;  %2242 = vmatpush3.msra.mxu0 %v4113_v32  ;;  %v4118_v29 = vld [vmem:[#allocation25_spill] sm:$0xff] }
 0x131   :  { %2286 = vmatprep.subr.mxu1 %v3377_v42  ;;  %2243 = vmatprep.subr.mxu0 %v4114_v48  ;;  %v4119_v42 = vld [vmem:[#allocation36_spill] sm:$0xff] }
 0x132   :  { %2287 = vmatpush3.msra.mxu1 %v3390_v28  ;;  %2244 = vmatpush3.msra.mxu0 %v4115_v10 }
 0x133   :  { %2288 = vmatprep.subr.mxu1 %v3401_v60  ;;  %2245 = vmatprep.subr.mxu0 %v4116_v27  ;;  %v4120_v60 = vld [vmem:[#allocation39_spill] sm:$0xff] }
 0x134   :  { %2289 = vmatpush3.msra.mxu1 %v3413_v25  ;;  %2246 = vmatpush3.msra.mxu0 %v4117_v11 }
 0x135   :  { %2290 = vmatprep.subr.mxu1 %v3422_v47  ;;  %2247 = vmatprep.subr.mxu0 %v4118_v29 }
 0x136   :  { %2291 = vmatpush3.msra.mxu1 %v3433_v14  ;;  %2248 = vmatpush3.msra.mxu0 %v4119_v42  ;;  %v4121_v14 = vand.u32 4294901760, %v3578_v8 }
 0x137   :  { %2292 = vmatprep.subr.mxu1 %v3443_v63  ;;  %2249 = vmatprep.subr.mxu0 %v3375_v5 }
 0x138   :  { %2293 = vmatpush3.msra.mxu1 %v3451_v38  ;;  %2250 = vmatpush3.msra.mxu0 %v4120_v60 }
 0x139   :  { %2294 = vmatprep.subr.mxu1 %v3461_v46  ;;  %2251 = vmatprep.subr.mxu0 %v3420_v41 }
 0x13a   :  { %2295 = vmatpush3.msra.mxu1 %v3471_v37  ;;  %2252 = vmatpush3.msra.mxu0 %v3431_v52 }
 0x13b   :  { %1639 = vmatmul.mubr.f32.vlgmr.msra.gmra.mxu1 %v4121_v14  ;;  %2334 = vmatprep.subr.mxu1 %v4096_v33  ;;  %v4140_v14 = vld [vmem:[#allocation33_spill] sm:$0xff] }
 0x13c   :  { %2253 = vmatprep.subr.mxu0 %v3441_v44  ;;  %2335 = vmatpush3.msra.mxu1 %v4097_v54 }
 0x13d   :  { %1947 = vmatprep.mubr.msk.f32.mxu1 %vm3324_vm4, %v3976_v40  ;;  %2254 = vmatpush3.msra.mxu0 %v3449_v16 }
 0x13e   :  { %2336 = vmatprep.subr.mxu1 %v3021_v13  ;;  %2255 = vmatprep.subr.mxu0 %v3459_v39  ;;  %v4122_v13 = vand.u32 4294901760, %v4100_v9 }
 0x13f   :  { %2337 = vmatpush3.msra.mxu1 %v4099_v58  ;;  %2256 = vmatpush3.msra.mxu0 %v3469_v18 }
 0x140   :  { %2338 = vmatprep.subr.mxu1 %v3049_v3  ;;  %2257 = vmatprep.subr.mxu0 %v3480_v23  ;;  %v4123_v3 = vand.u32 4294901760, %v4101_v34 }
 0x141   :  { %2339 = vmatpush3.msra.mxu1 %v3057_v43  ;;  %2258 = vmatpush3.msra.mxu0 %v3488_v22  ;;  %v4124_v43 = vand.u32 4294901760, %v4102_v0 }
 0x142   :  { %2340 = vmatprep.subr.mxu1 %v3076_v61  ;;  %2259 = vmatprep.subr.mxu0 %v3498_v49  ;;  %v4125_v61 = vand.u32 4294901760, %v4103_v2 }
 0x143   :  { %2341 = vmatpush3.msra.mxu1 %v3100_v4  ;;  %2260 = vmatpush3.msra.mxu0 %v3517_v19  ;;  %v4126_v4 = vand.u32 4294901760, %v4104_v51 }
 0x144   :  { %2342 = vmatprep.subr.mxu1 %v3110_v24  ;;  %1531 = vmatmul.mubr.f32.vlgmr.msra.gmra.mxu0 %v3578_v8  ;;  %v4127_v24 = vand.u32 4294901760, %v4105_v50  ;;  %v4144_v8 = vld [vmem:[#allocation34_spill] sm:$0xff] }
 0x145   :  { %2299 = vmatprep.subr.mxu0 %v4122_v13  ;;  %2343 = vmatpush3.msra.mxu1 %v3112_v6  ;;  %v4128_v6 = vand.u32 4294901760, %v4106_v12 }
 0x146   :  { %2300 = vmatpush3.msra.mxu0 %v4123_v3  ;;  %1945 = vmatprep.mubr.msk.f32.mxu0 %vm3324_vm4, %v3976_v40 }
 0x147   :  { %2344 = vmatprep.subr.mxu1 %v3121_v21  ;;  %2301 = vmatprep.subr.mxu0 %v4124_v43  ;;  %v4129_v21 = vand.u32 4294901760, %v4107_v20 }
 0x148   :  { %2345 = vmatpush3.msra.mxu1 %v3132_v30  ;;  %2302 = vmatpush3.msra.mxu0 %v4125_v61  ;;  %v4130_v30 = vand.u32 4294901760, %v4108_v56 }
 0x149   :  { %2346 = vmatprep.subr.mxu1 %v3156_v55  ;;  %2303 = vmatprep.subr.mxu0 %v4126_v4  ;;  %v4131_v55 = vand.u32 4294901760, %v4109_v62 }
 0x14a   :  { %2347 = vmatpush3.msra.mxu1 %v3170_v15  ;;  %2304 = vmatpush3.msra.mxu0 %v4127_v24  ;;  %v4132_v15 = vand.u32 4294901760, %v4110_v17 }
 0x14b   :  { %2348 = vmatprep.subr.mxu1 %v3184_v53  ;;  %2305 = vmatprep.subr.mxu0 %v4128_v6  ;;  %v4133_v53 = vand.u32 4294901760, %v4111_v35 }
 0x14c   :  { %2349 = vmatpush3.msra.mxu1 %v3194_v1  ;;  %2306 = vmatpush3.msra.mxu0 %v4129_v21  ;;  %v4135_v1 = vld [vmem:[#allocation32_spill] sm:$0xff] }
 0x14d   :  { %2350 = vmatprep.subr.mxu1 %v3204_v7  ;;  %2307 = vmatprep.subr.mxu0 %v4130_v30  ;;  %v4134_v7 = vand.u32 4294901760, %v4112_v59 }
 0x14e   :  { %2351 = vmatpush3.msra.mxu1 %v3214_v26  ;;  %2308 = vmatpush3.msra.mxu0 %v4131_v55  ;;  %v4136_v26 = vand.u32 4294901760, %v4113_v32  ;;  %v4142_v32 = vand.u32 4294901760, %v4117_v11 }
 0x14f   :  { %2352 = vmatprep.subr.mxu1 %v3234_v57  ;;  %2309 = vmatprep.subr.mxu0 %v4132_v15  ;;  %v4138_v57 = vand.u32 4294901760, %v4114_v48  ;;  %v4143_v48 = vand.u32 4294901760, %v4118_v29  ;;  %v4148_v29 = vand.u32 4294901760, %v3420_v41  ;;  %v4154_v41 = vand.u32 4294901760, %v3469_v18 }
 0x150   :  { %2353 = vmatpush3.msra.mxu1 %v3286_v31  ;;  %2310 = vmatpush3.msra.mxu0 %v4133_v53  ;;  %v4139_v31 = vand.u32 4294901760, %v4115_v10  ;;  %v4146_v10 = vand.u32 4294901760, %v3375_v5  ;;  %v4151_v5 = vand.u32 4294901760, %v3441_v44  ;;  %v4158_v44 = vand.u32 4294901760, %v3517_v19 }
 0x151   :  { %2354 = vmatprep.subr.mxu1 %v3313_v45  ;;  %2311 = vmatprep.subr.mxu0 %v4134_v7  ;;  %v4141_v45 = vand.u32 4294901760, %v4116_v27 }
 0x152   :  { %2355 = vmatpush3.msra.mxu1 %v4135_v1  ;;  %2312 = vmatpush3.msra.mxu0 %v4136_v26 }
 0x153   :  { %2356 = vmatprep.subr.mxu1 %v4137_v36  ;;  %2313 = vmatprep.subr.mxu0 %v4138_v57 }
 0x154   :  { %2357 = vmatpush3.msra.mxu1 %v3390_v28  ;;  %2314 = vmatpush3.msra.mxu0 %v4139_v31  ;;  %v4145_v28 = vand.u32 4294901760, %v4119_v42  ;;  %v4149_v42 = vand.u32 4294901760, %v3431_v52  ;;  %v4156_v52 = vand.u32 4294901760, %v3488_v22 }
 0x155   :  { %2358 = vmatprep.subr.mxu1 %v4140_v14  ;;  %2315 = vmatprep.subr.mxu0 %v4141_v45 }
 0x156   :  { %2359 = vmatpush3.msra.mxu1 %v3413_v25  ;;  %2316 = vmatpush3.msra.mxu0 %v4142_v32  ;;  %v4147_v25 = vand.u32 4294901760, %v4120_v60  ;;  %v4153_v60 = vand.u32 4294901760, %v3459_v39 }
 0x157   :  { %2360 = vmatprep.subr.mxu1 %v3422_v47  ;;  %2317 = vmatprep.subr.mxu0 %v4143_v48 }
 0x158   :  { %2361 = vmatpush3.msra.mxu1 %v4144_v8  ;;  %2318 = vmatpush3.msra.mxu0 %v4145_v28 }
 0x159   :  { %2362 = vmatprep.subr.mxu1 %v3443_v63  ;;  %2319 = vmatprep.subr.mxu0 %v4146_v10  ;;  %v4155_v63 = vand.u32 4294901760, %v3480_v23 }
 0x15a   :  { %2363 = vmatpush3.msra.mxu1 %v3451_v38  ;;  %2320 = vmatpush3.msra.mxu0 %v4147_v25  ;;  %v4152_v38 = vand.u32 4294901760, %v3449_v16 }
 0x15b   :  { %2364 = vmatprep.subr.mxu1 %v3461_v46  ;;  %2321 = vmatprep.subr.mxu0 %v4148_v29  ;;  %v4157_v46 = vand.u32 4294901760, %v3498_v49 }
 0x15c   :  { %2365 = vmatpush3.msra.mxu1 %v3471_v37  ;;  %2322 = vmatpush3.msra.mxu0 %v4149_v42 }
 0x15d   :  { %1948 = vmatmul.mubr.msk.f32.vlgmr.msra.gmra.mxu1 %vm3556_vm11, %v3976_v40  ;;  %2323 = vmatprep.subr.mxu0 %v4151_v5 }
 0x15e   :  { %2324 = vmatpush3.msra.mxu0 %v4152_v38 }
 0x15f   :  { %2325 = vmatprep.subr.mxu0 %v4153_v60 }
 0x160   :  { %2326 = vmatpush3.msra.mxu0 %v4154_v41 }
 0x161   :  { %2327 = vmatprep.subr.mxu0 %v4155_v63 }
 0x162   :  { %2328 = vmatpush3.msra.mxu0 %v4156_v52 }
 0x163   :  { %2329 = vmatprep.subr.mxu0 %v4157_v46 }
 0x164   :  { %2330 = vmatpush3.msra.mxu0 %v4158_v44 }
 0x165   :  { %1946 = vmatmul.mubr.msk.f32.vlgmr.msra.gmra.mxu0 %vm3556_vm11, %v3976_v40 }
 0x16e   :  { %v2016_v16 = vpop.f32.mrf.mxu1 }
 0x170   :  { %v2017_v11 = vpop.f32.mrf.mxu1 }
 0x171   :  { %v2018_v54 = vadd.f32 %v2017_v11, %v2016_v16 }
 0x177   :  { %v1981_v39 = vpop.f32.mrf.mxu0 }
 0x179   :  { %v1982_v18 = vpop.f32.mrf.mxu0 }
 0x17a   :  { %v1983_v33 = vadd.f32 %v1982_v18, %v1981_v39 }
 0x17c   :  { %v533_v9 = vadd.f32 %v2018_v54, %v1983_v33 }
 0x18f   :  { %v2086_v23 = vpop.f32.mrf.mxu1 }
 0x191   :  { %v2087_v49 = vpop.f32.mrf.mxu1 }
 0x192   :  { %v2088_v51 = vadd.f32 %v2087_v49, %v2086_v23 }
 0x198   :  { %v2051_v37 = vpop.f32.mrf.mxu0 }
 0x19a   :  { %v2052_v27 = vpop.f32.mrf.mxu0 }
 0x19b   :  { %v2053_v58 = vadd.f32 %v2052_v27, %v2051_v37 }
 0x19d   :  { %v671_v0 = vadd.f32 %v2053_v58, %v533_v9 }
 0x19f   :  { %v779_v12 = vadd.f32 %v2088_v51, %v671_v0 }
 0x1b3   :  { %v2156_v34 = vpop.f32.mrf.mxu1 }
 0x1b5   :  { %v2157_v40 = vpop.f32.mrf.mxu1 }
 0x1b6   :  { %v2158_v35 = vadd.f32 %v2157_v40, %v2156_v34 }
 0x1c1   :  { %v2121_v22 = vpop.f32.mrf.mxu0 }
 0x1c3   :  { %v2122_v19 = vpop.f32.mrf.mxu0 }
 0x1c4   :  { %v2123_v50 = vadd.f32 %v2122_v19, %v2121_v22 }
 0x1c6   :  { %v947_v62 = vadd.f32 %v2123_v50, %v779_v12 }
 0x1c8   :  { %v1051_v3 = vadd.f32 %v2158_v35, %v947_v62 }
 0x1d9   :  { %v2226_v20 = vpop.f32.mrf.mxu1 }
 0x1db   :  { %v2227_v13 = vpop.f32.mrf.mxu1 }
 0x1dc   :  { %v2228_v24 = vadd.f32 %v2227_v13, %v2226_v20 }
 0x1e2   :  { %v2191_v2 = vpop.f32.mrf.mxu0 }
 0x1e4   :  { %v2192_v56 = vpop.f32.mrf.mxu0 }
 0x1e5   :  { %v2193_v59 = vadd.f32 %v2192_v56, %v2191_v2 }
 0x1e7   :  { %v1163_v4 = vadd.f32 %v2193_v59, %v1051_v3 }
 0x1e9   :  { %v1395_v30 = vadd.f32 %v2228_v24, %v1163_v4 }
 0x1fb   :  { %v2296_v43 = vpop.f32.mrf.mxu1 }
 0x1fd   :  { %v2297_v21 = vpop.f32.mrf.mxu1 }
 0x1fe   :  { %v2298_v7 = vadd.f32 %v2297_v21, %v2296_v43 }
 0x204   :  { %v2261_v17 = vpop.f32.mrf.mxu0 }
 0x206   :  { %v2262_v61 = vpop.f32.mrf.mxu0 }
 0x207   :  { %v2263_v6 = vadd.f32 %v2262_v61, %v2261_v17 }
 0x209   :  { %v1533_v15 = vadd.f32 %v2263_v6, %v1395_v30 }
 0x20b   :  { %v1641_v36 = vadd.f32 %v2298_v7, %v1533_v15 }
 0x21d   :  { %v2366_v55 = vpop.f32.mrf.mxu1 }
 0x21f   :  { %v2367_v1 = vpop.f32.mrf.mxu1 }
 0x220   :  { %v2368_v31 = vadd.f32 %v2367_v1, %v2366_v55 }
 0x225   :  { %v2331_v53 = vpop.f32.mrf.mxu0 }
 0x227   :  { %v2332_v26 = vpop.f32.mrf.mxu0 }
 0x228   :  { %v2333_v57 = vadd.f32 %v2332_v26, %v2331_v53 }
 0x22a   :  { %v1809_v14 = vadd.f32 %v2333_v57, %v1641_v36 }
 0x22c   :  { %v1913_v45 = vadd.f32 %v2368_v31, %v1809_v14 }
 0x22e   :  { %1916 = vst [vmem:[#allocation7] sm:$0xff] %v1913_v45 }
 0x22f   :  { %2459 = shalt.err (!%p2456_p0)
}
 0x230   :  { %1926 = dma.vmem_to_hbm [thread:$0]  %s1924_s1, 128, %s3783_s2, [#allocation4]  }
 0x231   :  { %2472 = dma.done.wait [#allocation4], 128  }
 0x232   :  { %2473 = vsyncadd [#allocation4], 4294967168 }
 0x233   :  { %1930 = vsyncpa [#allocation3], 1 }
 0x234   :  { %1931 = vsyncpa [#allocation6], 1 }
 0x235   :  { %1932 = vsyncpa [#allocation4], 1 }

</bundles_post_ra>
